<compile_context>
chip_gen: v6e
topology: v6e:2x2x1
jax: 0.10.0
libtpu: 0.0.40
codegen_flags: <defaults>
</compile_context>

<pallas_src>
import jax
import jax.numpy as jnp
from jax import lax
from jax.experimental import pallas as pl
from jax.experimental.pallas import tpu as pltpu

TARGET_BLOCK_BATCH = 2048   # rows of x per grid step (upper bound)
BATCH_ALIGN = 128           # tile granularity (>= 1 full MXU row pass)


def _round_up(n, m):
    return ((n + m - 1) // m) * m


def _cdiv(a, b):
    return (a + b - 1) // b


def _choose_tiling(batch, *, target=TARGET_BLOCK_BATCH, align=BATCH_ALIGN):
    """Pick (block_batch, num_tiles): big tiles to amortize grid-step overhead,
    clamped to the real batch, and >= 2 tiles when possible for v7x megacore."""
    b_aligned = _round_up(max(batch, 1), align)
    num_tiles = _cdiv(b_aligned, target)
    if num_tiles == 1 and b_aligned >= 2 * align:
        num_tiles = 2                      # keep both TensorCores busy on v7x
    block_batch = _round_up(_cdiv(b_aligned, num_tiles), align)
    num_tiles = _cdiv(batch, block_batch)  # grid over the real (unpadded) batch
    return block_batch, num_tiles


def suicidenet_kernel(x_ref, w1_ref, b1_ref, w2_ref, b2_ref, w3_ref, b3_ref,
                      o_ref):
    # x arrives as raw f32; cast to bf16 on the VPU (hidden under the x DMA).
    x = x_ref[...].astype(jnp.bfloat16)
    # fc1: bf16 MXU matmul (K=500 handled by Mosaic), f32 accumulation.
    h1 = jnp.dot(x, w1_ref[...], preferred_element_type=jnp.float32)
    h1 = jnp.maximum(h1 + b1_ref[...], 0.0)
    # fc2: cast activations back to bf16 for the MXU, accumulate in f32.
    h2 = jnp.dot(h1.astype(jnp.bfloat16), w2_ref[...],
                 preferred_element_type=jnp.float32)
    h2 = jnp.maximum(h2 + b2_ref[...], 0.0)
    # fc3 (out_features == 1): contract w3 (1,64) against h2 (Bt,64) over the
    # feature axis so the result lands lane-dense as (1, Bt).  M=1/K=64 MXU
    # work is negligible; it replaces a lane-sparse (Bt,1) store path.
    z = lax.dot_general(w3_ref[...], h2,
                        dimension_numbers=(((1,), (1,)), ((), ())),
                        preferred_element_type=jnp.float32)
    o_ref[0] = jax.nn.sigmoid(z + b3_ref[0, 0])   # b3 scalar lives in SMEM


def init_params(key, in_dim, h1=100, h2=50, out=1):
    # PyTorch-style default Linear init: uniform(+/- 1/sqrt(fan_in)).
    # Weights stored as (in_features, out_features) so kernels compute x @ W.
    ks = jax.random.split(key, 6)

    def lin(kw, kb, fan_in, fan_out):
        bound = 1.0 / jnp.sqrt(fan_in)
        w = jax.random.uniform(kw, (fan_in, fan_out), jnp.float32,
                               minval=-bound, maxval=bound)
        b = jax.random.uniform(kb, (1, fan_out), jnp.float32,
                               minval=-bound, maxval=bound)
        return w, b

    w1, b1 = lin(ks[0], ks[1], in_dim, h1)
    w2, b2 = lin(ks[2], ks[3], h1, h2)
    w3, b3 = lin(ks[4], ks[5], h2, out)
    return (w1, b1, w2, b2, w3, b3)


def prepare_params(params):
    """Zero-pad hidden dims to aligned sizes and cast matmul weights to bf16.

    h1 -> 128 (exact MXU N on all chips), h2 -> 64.  fc1's K stays at its
    natural in_dim (Mosaic pads K internally).  Zero pads are exact: padded
    hidden columns get zero weights + zero bias, ReLU keeps them at 0, and the
    fc3 contraction multiplies them by zero.
    """
    w1, b1, w2, b2, w3, b3 = params
    in_dim, h1 = w1.shape
    h2 = w2.shape[1]
    h1_p = _round_up(h1, 128)   # 100 -> 128
    h2_p = _round_up(h2, 64)    # 50  -> 64

    w1p = jnp.zeros((in_dim, h1_p), jnp.bfloat16)
    w1p = w1p.at[:, :h1].set(w1.astype(jnp.bfloat16))
    b1p = jnp.zeros((1, h1_p), jnp.float32).at[:, :h1].set(b1)

    w2p = jnp.zeros((h1_p, h2_p), jnp.bfloat16)
    w2p = w2p.at[:h1, :h2].set(w2.astype(jnp.bfloat16))
    b2p = jnp.zeros((1, h2_p), jnp.float32).at[:, :h2].set(b2)

    # fc3 weight as a (1, h2_p) f32 row (contracted against h2 in-kernel);
    # b3 as a (1,1) SMEM scalar.
    w3p = jnp.zeros((1, h2_p), jnp.float32).at[:, :h2].set(w3[:, 0][None, :])
    b3p = b3.reshape(1, 1).astype(jnp.float32)
    return (w1p, b1p, w2p, b2p, w3p, b3p)


def suicidenet_forward(x, padded_params, *, target_block=TARGET_BLOCK_BATCH):
    w1p, b1p, w2p, b2p, w3p, b3p = padded_params
    B, in_dim = x.shape
    assert in_dim == w1p.shape[0]

    block_batch, num_tiles = _choose_tiling(B, target=target_block)

    grid_spec = pltpu.PrefetchScalarGridSpec(
        num_scalar_prefetch=0,
        grid=(num_tiles,),
        in_specs=[
            # x: raw f32, one (block_batch, in_dim) tile per step.  Last dim is
            # the full array extent (legal even though 500 % 128 != 0); the
            # ragged last batch block is clipped/padded by Pallas and the
            # padded rows are sliced off after the call.
            pl.BlockSpec((block_batch, in_dim), lambda i: (i, 0)),
            # Weights/biases: constant block index -> fetched once, resident.
            pl.BlockSpec(w1p.shape, lambda i: (0, 0)),
            pl.BlockSpec(b1p.shape, lambda i: (0, 0)),
            pl.BlockSpec(w2p.shape, lambda i: (0, 0)),
            pl.BlockSpec(b2p.shape, lambda i: (0, 0)),
            pl.BlockSpec(w3p.shape, lambda i: (0, 0)),
            # b3: single scalar, keep it in SMEM.
            pl.BlockSpec(memory_space=pltpu.MemorySpace.SMEM),
        ],
        # Lane-dense output slab: one (1, 1, block_batch) f32 row per step.
        out_specs=pl.BlockSpec((1, 1, block_batch), lambda i: (i, 0, 0)),
    )

    out = pl.pallas_call(
        suicidenet_kernel,
        out_shape=jax.ShapeDtypeStruct((num_tiles, 1, block_batch),
                                       jnp.float32),
        grid_spec=grid_spec,
        compiler_params=pltpu.CompilerParams(
            dimension_semantics=("parallel",),   # 2x on v7x (2 TCs), no-op v5e/v6e
            vmem_limit_bytes=32 * 1024 * 1024,   # ~16 MiB worst case at 2048 rows
        ),
    )(x, w1p, b1p, w2p, b2p, w3p, b3p)

    # (num_tiles, 1, block_batch) -> (B, 1); padded tail rows are dropped.
    return out.reshape(num_tiles * block_batch, 1)[:B]


def reference_forward(x, params):
    w1, b1, w2, b2, w3, b3 = params
    h1 = jax.nn.relu(x @ w1 + b1)
    h2 = jax.nn.relu(h1 @ w2 + b2)
    return jax.nn.sigmoid(h2 @ w3 + b3)


if __name__ == "__main__":
    # Module-consistent small shapes: input_words=20 -> in_dim = 20*25 = 500.
    # batch=300 exercises the adaptive tiling (two 256-row tiles), a ragged
    # last x block (only 44 valid rows) and the lane-dense output slab.
    input_words = 20
    in_dim = input_words * 25
    batch = 300

    key = jax.random.PRNGKey(0)
    kx, kp = jax.random.split(key)
    x = jax.random.normal(kx, (batch, in_dim), jnp.float32)
    params = init_params(kp, in_dim)
    dev_params = prepare_params(params)   # pad + bf16 cast, done once, reused

    out = suicidenet_forward(x, dev_params)
    out = jax.block_until_ready(out)

    ref = reference_forward(x, params)    # f32 reference on unpadded params
    assert out.shape == (batch, 1)
    max_err = float(jnp.max(jnp.abs(out - ref)))
    # bf16 matmul inputs vs f32 reference -> loosened tolerance.
    assert max_err < 2e-2, f"mismatch vs reference: max abs err {max_err}"

    print("KERNEL_OK")
</pallas_src>

<mosaic_0001>
module attributes {stable_mosaic.version = 11 : i64} {
  func.func @suicidenet_kernel(%arg0: i32, %arg1: memref<256x500xf32, #tpu.memory_space<vmem>>, %arg2: memref<500x128xbf16, #tpu.memory_space<vmem>>, %arg3: memref<1x128xf32, #tpu.memory_space<vmem>>, %arg4: memref<128x64xbf16, #tpu.memory_space<vmem>>, %arg5: memref<1x64xf32, #tpu.memory_space<vmem>>, %arg6: memref<1x64xf32, #tpu.memory_space<vmem>>, %arg7: memref<1x1xf32, #tpu.memory_space<smem>>, %arg8: memref<1x1x256xf32, #tpu.memory_space<vmem>>) attributes {dimension_semantics = [#tpu.dimension_semantics<parallel>], iteration_bounds = array<i64: 2>, scalar_prefetch = 0 : i64, scratch_operands = 0 : i64, tpu.core_type = #tpu.core_type<tc>, window_params = [{transform_indices = @transform_0, window_bounds = array<i64: 256, 500>}, {pipeline_mode = #tpu.pipeline_mode<synchronous>, transform_indices = @transform_1, window_bounds = array<i64: 500, 128>}, {pipeline_mode = #tpu.pipeline_mode<synchronous>, transform_indices = @transform_2, window_bounds = array<i64: 1, 128>}, {pipeline_mode = #tpu.pipeline_mode<synchronous>, transform_indices = @transform_3, window_bounds = array<i64: 128, 64>}, {pipeline_mode = #tpu.pipeline_mode<synchronous>, transform_indices = @transform_4, window_bounds = array<i64: 1, 64>}, {pipeline_mode = #tpu.pipeline_mode<synchronous>, transform_indices = @transform_5, window_bounds = array<i64: 1, 64>}, {transform_indices = @transform_6, window_bounds = array<i64: 1, 1>}, {transform_indices = @transform_7, window_bounds = array<i64: 1, 1, 256>}]} {
    %c0 = arith.constant 0 : index
    %c0_0 = arith.constant 0 : index
    %0 = vector.load %arg1[%c0, %c0_0] : memref<256x500xf32, #tpu.memory_space<vmem>>, vector<256x500xf32>
    %1 = arith.truncf %0 : vector<256x500xf32> to vector<256x500xbf16>
    %c0_1 = arith.constant 0 : index
    %c0_2 = arith.constant 0 : index
    %2 = vector.load %arg2[%c0_1, %c0_2] : memref<500x128xbf16, #tpu.memory_space<vmem>>, vector<500x128xbf16>
    %cst = arith.constant dense<0.000000e+00> : vector<256x128xf32>
    %3 = tpu.matmul %1, %2, %cst {dimension_numbers = #tpu.dot_dimension_numbers<[1], [0], [0], [1], [0, 0, 1, 1], [], []>} : vector<256x500xbf16>, vector<500x128xbf16>, vector<256x128xf32> -> vector<256x128xf32>
    %c0_3 = arith.constant 0 : index
    %c0_4 = arith.constant 0 : index
    %4 = vector.load %arg3[%c0_3, %c0_4] : memref<1x128xf32, #tpu.memory_space<vmem>>, vector<1x128xf32>
    %5 = vector.broadcast %4 : vector<1x128xf32> to vector<256x128xf32>
    %6 = arith.addf %3, %5 : vector<256x128xf32>
    %cst_5 = arith.constant 0.000000e+00 : f32
    %7 = vector.broadcast %cst_5 : f32 to vector<256x128xf32>
    %8 = arith.maximumf %6, %7 : vector<256x128xf32>
    %9 = arith.truncf %8 : vector<256x128xf32> to vector<256x128xbf16>
    %c0_6 = arith.constant 0 : index
    %c0_7 = arith.constant 0 : index
    %10 = vector.load %arg4[%c0_6, %c0_7] : memref<128x64xbf16, #tpu.memory_space<vmem>>, vector<128x64xbf16>
    %cst_8 = arith.constant dense<0.000000e+00> : vector<256x64xf32>
    %11 = tpu.matmul %9, %10, %cst_8 {dimension_numbers = #tpu.dot_dimension_numbers<[1], [0], [0], [1], [0, 0, 1, 1], [], []>} : vector<256x128xbf16>, vector<128x64xbf16>, vector<256x64xf32> -> vector<256x64xf32>
    %c0_9 = arith.constant 0 : index
    %c0_10 = arith.constant 0 : index
    %12 = vector.load %arg5[%c0_9, %c0_10] : memref<1x64xf32, #tpu.memory_space<vmem>>, vector<1x64xf32>
    %13 = vector.broadcast %12 : vector<1x64xf32> to vector<256x64xf32>
    %14 = arith.addf %11, %13 : vector<256x64xf32>
    %cst_11 = arith.constant 0.000000e+00 : f32
    %15 = vector.broadcast %cst_11 : f32 to vector<256x64xf32>
    %16 = arith.maximumf %14, %15 : vector<256x64xf32>
    %c0_12 = arith.constant 0 : index
    %c0_13 = arith.constant 0 : index
    %17 = vector.load %arg6[%c0_12, %c0_13] : memref<1x64xf32, #tpu.memory_space<vmem>>, vector<1x64xf32>
    %cst_14 = arith.constant dense<0.000000e+00> : vector<1x256xf32>
    %18 = tpu.matmul %17, %16, %cst_14 {dimension_numbers = #tpu.dot_dimension_numbers<[1], [1], [0], [0], [0, 0, 1, 0], [], []>} : vector<1x64xf32>, vector<256x64xf32>, vector<1x256xf32> -> vector<1x256xf32>
    %c0_15 = arith.constant 0 : index
    %c0_16 = arith.constant 0 : index
    %19 = memref.load %arg7[%c0_15, %c0_16] : memref<1x1xf32, #tpu.memory_space<smem>>
    %20 = vector.broadcast %19 : f32 to vector<1x256xf32>
    %21 = arith.addf %18, %20 : vector<1x256xf32>
    %22 = arith.negf %21 : vector<1x256xf32>
    %23 = math.exp %22 : vector<1x256xf32>
    %cst_17 = arith.constant 1.000000e+00 : f32
    %24 = vector.broadcast %cst_17 : f32 to vector<1x256xf32>
    %25 = arith.addf %24, %23 : vector<1x256xf32>
    %26 = arith.divf %24, %25 : vector<1x256xf32>
    %c0_18 = arith.constant 0 : index
    %c0_19 = arith.constant 0 : index
    %c0_20 = arith.constant 0 : index
    %27 = vector.load %arg8[%c0_18, %c0_19, %c0_20] : memref<1x1x256xf32, #tpu.memory_space<vmem>>, vector<1x1x256xf32>
    %28 = vector.shape_cast %27 : vector<1x1x256xf32> to vector<1x256xf32>
    %29 = vector.shape_cast %26 : vector<1x256xf32> to vector<1x1x256xf32>
    tpu.vector_store %arg8[%c0_18, %c0_19, %c0_20], %29 {strides = array<i32>} : memref<1x1x256xf32, #tpu.memory_space<vmem>>, vector<1x1x256xf32>,
    return
  }
  func.func @transform_0(%arg0: i32) -> (i32, i32) {
    %c0_i32 = arith.constant 0 : i32
    %c0_i32_0 = arith.constant 0 : i32
    return %arg0, %c0_i32 : i32, i32
  }
  func.func @transform_1(%arg0: i32) -> (i32, i32) {
    %c0_i32 = arith.constant 0 : i32
    %c0_i32_0 = arith.constant 0 : i32
    %c0_i32_1 = arith.constant 0 : i32
    return %c0_i32, %c0_i32_0 : i32, i32
  }
  func.func @transform_2(%arg0: i32) -> (i32, i32) {
    %c0_i32 = arith.constant 0 : i32
    %c0_i32_0 = arith.constant 0 : i32
    %c0_i32_1 = arith.constant 0 : i32
    return %c0_i32, %c0_i32_0 : i32, i32
  }
  func.func @transform_3(%arg0: i32) -> (i32, i32) {
    %c0_i32 = arith.constant 0 : i32
    %c0_i32_0 = arith.constant 0 : i32
    %c0_i32_1 = arith.constant 0 : i32
    return %c0_i32, %c0_i32_0 : i32, i32
  }
  func.func @transform_4(%arg0: i32) -> (i32, i32) {
    %c0_i32 = arith.constant 0 : i32
    %c0_i32_0 = arith.constant 0 : i32
    %c0_i32_1 = arith.constant 0 : i32
    return %c0_i32, %c0_i32_0 : i32, i32
  }
  func.func @transform_5(%arg0: i32) -> (i32, i32) {
    %c0_i32 = arith.constant 0 : i32
    %c0_i32_0 = arith.constant 0 : i32
    %c0_i32_1 = arith.constant 0 : i32
    return %c0_i32, %c0_i32_0 : i32, i32
  }
  func.func @transform_6(%arg0: i32) -> (i32, i32) {
    %c0_i32 = arith.constant 0 : i32
    %c0_i32_0 = arith.constant 0 : i32
    %c0_i32_1 = arith.constant 0 : i32
    return %c0_i32, %c0_i32_0 : i32, i32
  }
  func.func @transform_7(%arg0: i32) -> (i32, i32, i32) {
    %c0_i32 = arith.constant 0 : i32
    %c0_i32_0 = arith.constant 0 : i32
    %c0_i32_1 = arith.constant 0 : i32
    return %arg0, %c0_i32, %c0_i32_0 : i32, i32, i32
  }
}

</mosaic_0001>

<bundles_post_ra>
// kernel: tpu_custom_call.1
= control target key start
LH: loop header
LB: loop body
LE: loop exit
PB: predicated region body
PF: predicated region fallthrough
CT: control target
= control target key end

     0   :  { %s2995_s0 = inlined_call_operand.hbm [shape: f32[300,500], index: 0, kind: input, shape index: {}]   ;;  %s2996_s1 = inlined_call_operand.hbm [shape: bf16[500,128], index: 1, kind: input, shape index: {}]   ;;  %s2997_s2 = inlined_call_operand.vmem [shape: f32[1,128], index: 2, kind: input, shape index: {}]   ;;  %s2998_s3 = inlined_call_operand.vmem [shape: bf16[128,64], index: 3, kind: input, shape index: {}]   ;;  %s2999_s4 = inlined_call_operand.vmem [shape: f32[1,64], index: 4, kind: input, shape index: {}]   ;;  %s3000_s5 = inlined_call_operand.vmem [shape: f32[1,64], index: 5, kind: input, shape index: {}]   ;;  %s3001_s6 = inlined_call_operand.<no memory space> [shape: f32[1,1], index: 6, kind: input, shape index: {}]   ;;  %s3002_s7 = inlined_call_operand.hbm [shape: f32[2,1,256], index: 7, kind: output, shape index: {}]  }
   0x1   :  { %3006 = sst [smem:[#allocation12_spill]] %s2996_s1 }
   0x2   :  { %12 = sst [smem:[#allocation2]] %s3001_s6 }
   0x3   :  { %13 = vsyncpa [#allocation4], 0 }
   0x4   :  { %15 = vsyncpa [#allocation4 + $0x1], 0 }
   0x5   :  { %16 = vsyncpa [#allocation7], 0 }
   0x6   :  { %17 = vsyncpa [#allocation5], 0 }
   0x7   :  { %19 = vsyncpa [#allocation5 + $0x1], 0  ;;  %s2497_s26 = smov 0   ;;  %s2499_s27 = smov 0  }
   0x8   :  { %s2501_s28 = smov 0   ;;  %s2503_s29 = smov 0  }
   0x9 LB: > { %s2518_s6 = sadd.s32 4294967295, %s2444_s29   ;;  %s1770_s30 = sadd.s32 4294967294, %s2444_s29   ;;  %s2444_s29 = sphi %s2503_s29, %s3020_s29   ;;  %s2440_s28 = sphi %s2501_s28, %s3019_s28   ;;  %s2436_s27 = sphi %s2499_s27, %s3018_s27   ;;  %s2432_s26 = sphi %s2497_s26, %s3017_s26  }
   0xa   : > { %s2522_s8 = sadd.s32 1, %s2444_s29   ;;  %s32_s9 = sadd.s32 1, %s2440_s28 }
   0xb   : > { %s29_s10 = ssub.s32 %s2444_s29, %s2522_s8  ;;  %p39_p0 = scmp.ne.s32.totalorder %s2440_s28, %s2436_s27 }
   0xc   : > { %p30_p1 = scmp.eq.s32.totalorder %s29_s10, 0  ;;  %p40_p2 = scmp.eq.s32.totalorder %s2444_s29, 0 }
   0xd   : > { %p45_p3 = scmp.ne.s32.totalorder %s2436_s27, %s2432_s26  ;;  %p46_p4 = scmp.eq.s32.totalorder %s2518_s6, 0 }
   0xe   : > { %s2534_s11 = scalar_select %p30_p1, %s2440_s28, %s32_s9  }
   0xf   : > { %p2536_p5 = por %p40_p2, %p39_p0  ;;  %p2542_p6 = por %p46_p4, %p45_p3 }
  0x10   : > { %p195_p7 = scmp.eq.s32.totalorder %s2518_s6, 1  ;;  %p201_p8 = scmp.eq.s32.totalorder %s1770_s30, 1 }
  0x11   : > { %s3008_s13 = scalar_select %p2542_p6, 1, 0 }
  0x12   : > { %p1771_p9 = scmp.ge.s32.totalorder %s2444_s29, 1  ;;  %p208_p10 = scmp.lt.s32.totalorder %s2444_s29, 3 }
  0x13   : > { %p2549_p11 = por %p195_p7, %p39_p0  ;;  %p2553_p12 = por %p201_p8, %p45_p3 }
  0x14   : > { %p2557_p13 = pnand %p1771_p9, %p208_p10  ;;  %s2446_s17 = smov [#allocation6]  }
  0x15   : > { %s3009_s14 = scalar_select %p2549_p11, 1, 0 }
  0x16   : > { %s3010_s15 = scalar_select %p2553_p12, 1, 0 }
  0x17   : > { %p2227_p1 = pneg %p2557_p13  ;;  %s220_s18 = sshll.u32 %s2446_s17, 4  ;;  %s221_s18 = int_to_ptr.vmem [resolvable:$true] %s220_s18 }
  0x18   : > { %s2335_s19 = scalar_lea.vmem %s221_s18, 4032  ;;  %p2343_p8 = scmp.lt.s32.totalorder %s221_s18, %s221_s18 }
  0x19   : > { %p2228_p2 = pnand %p2227_p1, %p46_p4  ;;  %p2336_p7 = scmp.ne.s32.totalorder %s221_s18, %s2335_s19 }
  0x1a   : > { %p2344_p6 = scmp.lt.s32.totalorder %s2335_s19, %s2335_s19 }
  0x1b   : > { %p2326_p0 = pneg %p2228_p2 }
  0x1c   : > { %p2345_p12 = por %p2344_p6, %p2343_p8 }
  0x1d   : > { %p2338_p11 = pnand %p2336_p7, %p2326_p0 }
  0x1f   : > { %p2339_p3 = pneg %p2338_p11 }
  0x21   : > { %p2346_p9 = pnand %p2345_p12, %p2339_p3 }
  0x23   : > { %2349 = shalt.err (!%p2346_p9)
}
  0x24   : > { %s2447_s20 = smov 64   ;;  %s2448_s21 = smov 4  }
  0x25   : > { %s3012_s1 = sld [smem:[#allocation12_spill]]  ;;  %p3005_p10 = scmp.ge.s32.totalorder %s2444_s29, 2 }
  0x27   : > { %245 = sbr.rel (%p3005_p10) target bundleno = 76 (0x4c), region = 40 }
  0x2b   : > { %2230 = dma.hbm_to_vmem [thread:$0]  (!%p2228_p2), %s3012_s1, 4032, %s221_s18, [#allocation7], %s2447_s20, %s2447_s20, %s2448_s21  }
  0x2c   : > { %248 = sbr.rel (!%p2536_p5) target bundleno = 76 (0x4c), region = 44  ;;  %s249_s24 = sand.u32 (%p2536_p5), 1, %s2440_s28  }
  0x2d   : > { %s1775_s25 = sshll.u32 (%p2536_p5), %s2444_s29, 5  ;;  %s1774_s30 = sshll.u32 (%p2536_p5), %s249_s24, 10 }
  0x2e   : > { %s255_s9 = ssub.s32 (%p2536_p5), 38, %s1775_s25  ;;  %s2578_s18 = scalar_lea.sflag (%p2536_p5), [#allocation4], %s249_s24 }
  0x2f   : > { %p256_p6 = scmp.lt.s32.totalorder (%p2536_p5), %s255_s9, 32  ;;  %s253_s19 = scalar_lea.vmem (%p2536_p5), [#allocation3], %s1774_s30 }
  0x31   : > { %s3022_s9 = smov (!%p256_p6, %s255_s9), 32 }
  0x32   : > { %s2575_s10 = sshll.u32 %s3022_s9, 9 }
  0x33   : > { %s261_s17 = ssub.s32 16384, %s2575_s10 }
  0x34   : > { %262 = vsyncadd %s2578_s18, %s261_s17  ;;  %p1778_p5 = scmp.ne.s32.totalorder %s2575_s10, 0  ;;  %s1887_s12 = sshll.u32 %s2444_s29, 14 }
  0x35   : > { %s2586_s22 = scalar_lea.hbm %s2995_s0, %s1887_s12  ;;  %s268_s23 = sshll.u32 %s253_s19, 4  ;;  %s2588_s23 = int_to_ptr.vmem [resolvable:$true] %s268_s23 }
  0x36   : > { %s2350_s24 = scalar_lea.hbm %s2586_s22, %s2575_s10  ;;  %s2354_s9 = scalar_lea.hbm %s2995_s0, 19456 }
  0x37   : > { %p2351_p11 = scmp.ne.s32.totalorder %s2586_s22, %s2350_s24  ;;  %p2355_p2 = scmp.lt.s32.totalorder %s2586_s22, %s2995_s0 }
  0x38   : > { %p2356_p0 = scmp.lt.s32.totalorder %s2354_s9, %s2350_s24 }
  0x39   : > { %p2352_p12 = pnand %p2351_p11, %p1778_p5 }
  0x3a   : > { %p2357_p7 = por %p2356_p0, %p2355_p2 }
  0x3b   : > { %p2353_p1 = pneg %p2352_p12 }
  0x3d   : > { %p2358_p3 = pnand %p2357_p7, %p2353_p1 }
  0x3f   : > { %2361 = shalt.err (!%p2358_p3)
}
  0x40   : > { %s2362_s19 = scalar_lea.vmem %s2588_s23, %s2575_s10  ;;  %s2449_s12 = smov [#allocation3]  }
  0x41   : > { %p2363_p8 = scmp.ne.s32.totalorder %s2588_s23, %s2362_s19  ;;  %s2366_s20 = sshll.u32 %s2449_s12, 4  ;;  %s2367_s20 = int_to_ptr.vmem [resolvable:$false] %s2366_s20 }
  0x42   : > { %s2368_s21 = scalar_lea.vmem %s2367_s20, 32768  ;;  %p2369_p11 = scmp.lt.s32.totalorder %s2588_s23, %s2367_s20 }
  0x43   : > { %p2364_p9 = pnand %p2363_p8, %p1778_p5  ;;  %p2370_p12 = scmp.lt.s32.totalorder %s2368_s21, %s2362_s19 }
  0x45   : > { %p2365_p6 = pneg %p2364_p9  ;;  %p2371_p10 = por %p2370_p12, %p2369_p11 }
  0x47   : > { %p2372_p2 = pnand %p2371_p10, %p2365_p6 }
  0x49   : > { %2375 = shalt.err (!%p2372_p2)
}
  0x4a   : > { %s2450_s1 = smov 512   ;;  %s2451_s24 = smov 32  }
  0x4b   : > { %274 = dma.hbm_to_vmem [thread:$0]  (%p1778_p5), %s2586_s22, %s2575_s10, %s2588_s23, %s2578_s18, %s2450_s1, %s2450_s1, %s2451_s24  }
  0x4c PF: > { %280 = sbr.rel (%p2557_p13) target bundleno = 960 (0x3c0), region = 48  ;;  %s2617_s25 = sand.u32 (!%p2557_p13), 1, %s2436_s27  }
  0x4d   : > { %s1784_s30 = sshll.u32 (!%p2557_p13), %s2617_s25, 10  ;;  %s283_s9 = scalar_lea.sflag (!%p2557_p13), [#allocation4], %s2617_s25 }
  0x4e   : > { %s2621_s17 = scalar_lea.vmem (!%p2557_p13), [#allocation3], %s1784_s30  ;;  %p3013_p10 = scmp.ne.s32.totalorder (!%p2557_p13), %s3008_s13, 0 }
  0x51   : > { %2419 = dma.done.wait (%p3013_p10), %s283_s9, 16384  }
  0x52   : > { %2421 = vsyncadd (%p3013_p10), %s283_s9, 4294950912 }
  0x53   : > { %2423 = dma.done.wait (%p46_p4), [#allocation7], 4032  }
  0x54   : > { %2425 = vsyncadd (%p46_p4), [#allocation7], 4294963264  ;;  %v2276_v0 = vld [vmem:[#allocation6 + $0x78] sm:$0xff]   ;;  %vm828_vm0 = vcmask 1041408   ;;  %v2280_v4 = vld [vmem:[#allocation6 + $0x70] sm:$0xff]   ;;  %vm779_vm1 = vcmask 949248  }
  0x55   : > { %v2277_v1 = vld [vmem:[#allocation6 + $0xf8] ss:$0 sps:$4 sm:$0x33]   ;;  %1889 = vmatprep.subr.bf16.mxu0 %v2276_v0  ;;  %v2281_v5 = vld [vmem:[#allocation6 + $0xf0] sm:$0xff]   ;;  %v2284_v8 = vld [vmem:[#allocation6 + $0x68] sm:$0xff]   ;;  %vm1469_vm2 = vcmask 523264  }
  0x56   : > { %v2278_v2 = vld [vmem:[#allocation6 + $0x38] sm:$0xff]   ;;  %2219 = vmatprep.subr.msk.bf16.mxu1 %vm828_vm0, %v2277_v1  ;;  %v2282_v6 = vld [vmem:[#allocation6 + $0x30] sm:$0xff]   ;;  %v2285_v9 = vld [vmem:[#allocation6 + $0xe8] sm:$0xff]   ;;  %s1467_s12 = sld [smem:[#allocation2]]  ;;  %s1786_s20 = sshll.u32 %s2617_s25, 1 }
  0x57   : > { %1890 = vmatpush3.bf16.msra.mxu0 %v2278_v2  ;;  %v2279_v3 = vld [vmem:[#allocation6 + $0xb8] sm:$0xff]   ;;  %v2283_v7 = vld [vmem:[#allocation6 + $0xb0] sm:$0xff]   ;;  %v2286_v10 = vld [vmem:[#allocation6 + $0x28] sm:$0xff]   ;;  %s1888_s21 = sshll.u32 %s2518_s6, 5  ;;  %s320_s1 = scalar_lea.vmem [#allocation8], %s1786_s20 }
  0x58   : > { %2002 = vmatpush3.bf16.msra.mxu1 %v2279_v3  ;;  %1891 = vmatprep.subr.bf16.mxu0 %v2280_v4  ;;  %v2287_v11 = vld [vmem:[#allocation6 + $0xa8] sm:$0xff]   ;;  %v2288_v12 = vld [vmem:[#allocation6 + $0x60] sm:$0xff]   ;;  %v2292_v16 = vld [vmem:[#allocation6 + $0x58] sm:$0xff]   ;;  %s1690_s24 = sshll.u32 %s320_s1, 4  ;;  %s1688_s13 = scalar_lea.hbm %s3002_s7, %s1888_s21  ;;  %s1691_s24 = int_to_ptr.vmem [resolvable:$true] %s1690_s24 }
  0x59   : > { %2003 = vmatprep.subr.bf16.mxu1 %v2281_v5  ;;  %v2289_v13 = vld [vmem:[#allocation6 + $0xe0] sm:$0xff]   ;;  %v2293_v17 = vld [vmem:[#allocation6 + $0xd8] sm:$0xff]   ;;  %v2296_v20 = vld [vmem:[#allocation6 + $0x50] sm:$0xff]   ;;  %s1676_s16 = scalar_lea.sflag [#allocation5], %s2617_s25  ;;  %s2376_s10 = scalar_lea.vmem %s1691_s24, 32 }
  0x5a   : > { %v2290_v14 = vld [vmem:[#allocation6 + $0x20] sm:$0xff]   ;;  %v2294_v18 = vld [vmem:[#allocation6 + $0x18] sm:$0xff]   ;;  %v2297_v21 = vld [vmem:[#allocation6 + $0xd0] sm:$0xff]   ;;  %p2377_p4 = scmp.ne.s32.totalorder %s1691_s24, %s2376_s10  ;;  %p3014_p13 = scmp.ne.s32.totalorder %s3009_s14, 0 }
  0x5b   : > { %1892 = vmatpush3.bf16.msra.mxu0 %v2282_v6  ;;  %v2291_v15 = vld [vmem:[#allocation6 + $0xa0] sm:$0xff]   ;;  %v2295_v19 = vld [vmem:[#allocation6 + $0x98] sm:$0xff]   ;;  %v2298_v22 = vld [vmem:[#allocation6 + $0x10] sm:$0xff]   ;;  %s2453_s18 = smov [#allocation8]  }
  0x5c   : > { %2004 = vmatpush3.bf16.msra.mxu1 %v2283_v7  ;;  %1893 = vmatprep.subr.bf16.mxu0 %v2284_v8  ;;  %v2299_v23 = vld [vmem:[#allocation6 + $0x90] sm:$0xff]   ;;  %v2300_v24 = vld [vmem:[#allocation6 + $0x48] sm:$0xff]   ;;  %v2304_v28 = vld [vmem:[#allocation6 + $0x40] sm:$0xff]   ;;  %p2378_p5 = pnand %p2377_p4, %p3014_p13 }
  0x5d   : > { %2005 = vmatprep.subr.bf16.mxu1 %v2285_v9  ;;  %v2301_v25 = vld [vmem:[#allocation6 + $0xc8] sm:$0xff]   ;;  %v2305_v29 = vld [vmem:[#allocation6 + $0xc0] sm:$0xff]   ;;  %v331_v34 = vld [vmem:[%s2621_s17 + $0x18] sm:$0xff] }
  0x5e   : > { %v2302_v26 = vld [vmem:[#allocation6 + $0x8] sm:$0xff]   ;;  %v2306_v30 = vld [vmem:[#allocation6] sm:$0xff]   ;;  %v335_v35 = vld [vmem:[%s2621_s17 + $0x38] sm:$0xff]  ;;  %p2379_p1 = pneg %p2378_p5 }
  0x5f   : > { %1894 = vmatpush3.bf16.msra.mxu0 %v2286_v10  ;;  %v2303_v27 = vld [vmem:[#allocation6 + $0x88] sm:$0xff]   ;;  %v2307_v31 = vld [vmem:[#allocation6 + $0x80] sm:$0xff]   ;;  %v459_v37 = vpack.c.bf16 %v335_v35, %v331_v34  ;;  %v330_v40 = vld [vmem:[%s2621_s17 + $0x10] sm:$0xff] }
  0x60   : > { %2006 = vmatpush3.bf16.msra.mxu1 %v2287_v11  ;;  %1895 = vmatprep.subr.bf16.mxu0 %v2288_v12  ;;  %v329_v32 = vld [vmem:[%s2621_s17 + $0x8] sm:$0xff]  ;;  %v328_v38 = vld [vmem:[%s2621_s17] sm:$0xff]  ;;  %v334_v42 = vld [vmem:[%s2621_s17 + $0x30] sm:$0xff] }
  0x61   : > { %2007 = vmatprep.subr.bf16.mxu1 %v2289_v13  ;;  %v333_v33 = vld [vmem:[%s2621_s17 + $0x28] sm:$0xff]  ;;  %v332_v39 = vld [vmem:[%s2621_s17 + $0x20] sm:$0xff]  ;;  %1820 = vmatprep.mubr.msk.bf16.mxu1 %vm779_vm1, %v459_v37  ;;  %v458_v45 = vpack.c.bf16 %v334_v42, %v330_v40  ;;  %v339_v47 = vld [vmem:[%s2621_s17 + $0x58] sm:$0xff] }
  0x62   : > { %v457_v36 = vpack.c.bf16 %v333_v33, %v329_v32  ;;  %v456_v41 = vpack.c.bf16 %v332_v39, %v328_v38  ;;  %v337_v43 = vld [vmem:[%s2621_s17 + $0x48] sm:$0xff]  ;;  %v343_v48 = vld [vmem:[%s2621_s17 + $0x78] sm:$0xff]  ;;  %v336_v50 = vld [vmem:[%s2621_s17 + $0x40] sm:$0xff] }
  0x63   : > { %1896 = vmatpush3.bf16.msra.mxu0 %v2290_v14  ;;  %v341_v44 = vld [vmem:[%s2621_s17 + $0x68] sm:$0xff]  ;;  %v463_v49 = vpack.c.bf16 %v343_v48, %v339_v47  ;;  %v340_v51 = vld [vmem:[%s2621_s17 + $0x60] sm:$0xff]  ;;  %v338_v52 = vld [vmem:[%s2621_s17 + $0x50] sm:$0xff] }
  0x64   : > { %2008 = vmatpush3.bf16.msra.mxu1 %v2291_v15  ;;  %1897 = vmatprep.subr.bf16.mxu0 %v2292_v16  ;;  %v461_v46 = vpack.c.bf16 %v341_v44, %v337_v43  ;;  %v342_v53 = vld [vmem:[%s2621_s17 + $0x70] sm:$0xff]  ;;  %v345_v54 = vld [vmem:[%s2621_s17 + $0x88] sm:$0xff]  ;;  %v347_v56 = vld [vmem:[%s2621_s17 + $0x98] sm:$0xff]  ;;  %v460_v58 = vpack.c.bf16 %v340_v51, %v336_v50 }
  0x65   : > { %2009 = vmatprep.subr.bf16.mxu1 %v2293_v17  ;;  %864 = vmatprep.mubr.bf16.mxu0 %v457_v36  ;;  %v349_v55 = vld [vmem:[%s2621_s17 + $0xa8] sm:$0xff]  ;;  %v351_v57 = vld [vmem:[%s2621_s17 + $0xb8] sm:$0xff]  ;;  %v462_v59 = vpack.c.bf16 %v342_v53, %v338_v52  ;;  %v344_v62 = vld [vmem:[%s2621_s17 + $0x80] sm:$0xff] }
  0x66   : > { %v465_v60 = vpack.c.bf16 %v349_v55, %v345_v54  ;;  %v467_v61 = vpack.c.bf16 %v351_v57, %v347_v56  ;;  %v348_v63 = vld [vmem:[%s2621_s17 + $0xa0] sm:$0xff]  ;;  %v346_v0 = vld [vmem:[%s2621_s17 + $0x90] sm:$0xff]  ;;  %v353_v2 = vld [vmem:[%s2621_s17 + $0xc8] sm:$0xff] }
  0x67   : > { %1898 = vmatpush3.bf16.msra.mxu0 %v2294_v18  ;;  %v350_v1 = vld [vmem:[%s2621_s17 + $0xb0] sm:$0xff]  ;;  %v357_v3 = vld [vmem:[%s2621_s17 + $0xe8] sm:$0xff]  ;;  %v355_v4 = vld [vmem:[%s2621_s17 + $0xd8] sm:$0xff]  ;;  %v464_v6 = vpack.c.bf16 %v348_v63, %v344_v62 }
  0x68   : > { %2010 = vmatpush3.bf16.msra.mxu1 %v2295_v19  ;;  %1899 = vmatprep.subr.bf16.mxu0 %v2296_v20  ;;  %v359_v5 = vld [vmem:[%s2621_s17 + $0xf8] sm:$0xff]  ;;  %v466_v7 = vpack.c.bf16 %v350_v1, %v346_v0  ;;  %v469_v8 = vpack.c.bf16 %v357_v3, %v353_v2  ;;  %v352_v10 = vld [vmem:[%s2621_s17 + $0xc0] sm:$0xff]  ;;  %v354_v12 = vld [vmem:[%s2621_s17 + $0xd0] sm:$0xff] }
  0x69   : > { %2011 = vmatprep.subr.bf16.mxu1 %v2297_v21  ;;  %v471_v9 = vpack.c.bf16 %v359_v5, %v355_v4  ;;  %v356_v11 = vld [vmem:[%s2621_s17 + $0xe0] sm:$0xff]  ;;  %v358_v13 = vld [vmem:[%s2621_s17 + $0xf0] sm:$0xff]  ;;  %v361_v14 = vld [vmem:[%s2621_s17 + $0x108] sm:$0xff] }
  0x6a   : > { %v365_v15 = vld [vmem:[%s2621_s17 + $0x128] sm:$0xff]  ;;  %v363_v16 = vld [vmem:[%s2621_s17 + $0x118] sm:$0xff]  ;;  %v468_v18 = vpack.c.bf16 %v356_v11, %v352_v10  ;;  %v470_v19 = vpack.c.bf16 %v358_v13, %v354_v12  ;;  %v368_v34 = vld [vmem:[%s2621_s17 + $0x140] sm:$0xff] }
  0x6b   : > { %1900 = vmatpush3.bf16.msra.mxu0 %v2298_v22  ;;  %v367_v17 = vld [vmem:[%s2621_s17 + $0x138] sm:$0xff]  ;;  %v473_v20 = vpack.c.bf16 %v365_v15, %v361_v14  ;;  %v360_v22 = vld [vmem:[%s2621_s17 + $0x100] sm:$0xff]  ;;  %v370_v36 = vld [vmem:[%s2621_s17 + $0x150] sm:$0xff] }
  0x6c   : > { %2012 = vmatpush3.bf16.msra.mxu1 %v2299_v23  ;;  %1901 = vmatprep.subr.bf16.mxu0 %v2300_v24  ;;  %v475_v21 = vpack.c.bf16 %v367_v17, %v363_v16  ;;  %v364_v23 = vld [vmem:[%s2621_s17 + $0x120] sm:$0xff]  ;;  %v362_v24 = vld [vmem:[%s2621_s17 + $0x110] sm:$0xff]  ;;  %v377_v38 = vld [vmem:[%s2621_s17 + $0x188] sm:$0xff] }
  0x6d   : > { %2013 = vmatprep.subr.bf16.mxu1 %v2301_v25  ;;  %v366_v25 = vld [vmem:[%s2621_s17 + $0x130] sm:$0xff]  ;;  %v372_v35 = vld [vmem:[%s2621_s17 + $0x160] sm:$0xff]  ;;  %v381_v39 = vld [vmem:[%s2621_s17 + $0x1a8] sm:$0xff] }
  0x6e   : > { %v374_v37 = vld [vmem:[%s2621_s17 + $0x170] sm:$0xff]  ;;  %v379_v40 = vld [vmem:[%s2621_s17 + $0x198] sm:$0xff]  ;;  %v476_v42 = vpack.c.bf16 %v372_v35, %v368_v34  ;;  %v481_v44 = vpack.c.bf16 %v381_v39, %v377_v38  ;;  %v380_v47 = vld [vmem:[%s2621_s17 + $0x1a0] sm:$0xff] }
  0x6f   : > { %1902 = vmatpush3.bf16.msra.mxu0 %v2302_v26  ;;  %v369_v26 = vld [vmem:[%s2621_s17 + $0x148] sm:$0xff]  ;;  %v478_v43 = vpack.c.bf16 %v374_v37, %v370_v36  ;;  %v2308_v48 = vld [vmem:[%s2998_s3 + $0x38] sm:$0xff]   ;;  %v382_v50 = vld [vmem:[%s2621_s17 + $0x1b0] sm:$0xff] }
  0x70   : > { %2014 = vmatpush3.bf16.msra.mxu1 %v2303_v27  ;;  %1903 = vmatprep.subr.bf16.mxu0 %v2304_v28  ;;  %v373_v27 = vld [vmem:[%s2621_s17 + $0x168] sm:$0xff]  ;;  %v371_v28 = vld [vmem:[%s2621_s17 + $0x158] sm:$0xff]  ;;  %v2309_v53 = vld [vmem:[%s2998_s3 + $0x30] sm:$0xff]  }
  0x71   : > { %2015 = vmatprep.subr.bf16.mxu1 %v2305_v29  ;;  %v375_v29 = vld [vmem:[%s2621_s17 + $0x178] sm:$0xff]  ;;  %v477_v32 = vpack.c.bf16 %v373_v27, %v369_v26  ;;  %v385_v51 = vld [vmem:[%s2621_s17 + $0x1c8] sm:$0xff]  ;;  %v386_v62 = vld [vmem:[%s2621_s17 + $0x1d0] sm:$0xff] }
  0x72   : > { %v479_v33 = vpack.c.bf16 %v375_v29, %v371_v28  ;;  %v389_v52 = vld [vmem:[%s2621_s17 + $0x1e8] sm:$0xff]  ;;  %v387_v54 = vld [vmem:[%s2621_s17 + $0x1d8] sm:$0xff]  ;;  %v390_v63 = vld [vmem:[%s2621_s17 + $0x1f0] sm:$0xff] }
  0x73   : > { %1904 = vmatpush3.bf16.msra.mxu0 %v2306_v30  ;;  %v472_v30 = vpack.c.bf16 %v364_v23, %v360_v22  ;;  %v391_v55 = vld [vmem:[%s2621_s17 + $0x1f8] sm:$0xff]  ;;  %v393_v0 = vld [vmem:[%s2621_s17 + $0x208] sm:$0xff]  ;;  %v486_v5 = vpack.c.bf16 %v390_v63, %v386_v62  ;;  %v394_v10 = vld [vmem:[%s2621_s17 + $0x210] sm:$0xff] }
  0x74   : > { %2016 = vmatpush3.bf16.msra.mxu1 %v2307_v31  ;;  %v474_v31 = vpack.c.bf16 %v366_v25, %v362_v24  ;;  %2171 = vmatprep.subr.bf16.mxu0 %v2308_v48  ;;  %v397_v1 = vld [vmem:[%s2621_s17 + $0x228] sm:$0xff]  ;;  %v395_v2 = vld [vmem:[%s2621_s17 + $0x218] sm:$0xff]  ;;  %v398_v11 = vld [vmem:[%s2621_s17 + $0x230] sm:$0xff] }
  0x75   : > { %v399_v3 = vld [vmem:[%s2621_s17 + $0x238] sm:$0xff]  ;;  %v401_v12 = vld [vmem:[%s2621_s17 + $0x248] sm:$0xff]  ;;  %v490_v17 = vpack.c.bf16 %v398_v11, %v394_v10  ;;  %v404_v22 = vld [vmem:[%s2621_s17 + $0x260] sm:$0xff] }
  0x76   : > { %865 = vmatmul.mubr.bf16.vlgmr.msra.gmra.mxu0 %v456_v41  ;;  %v383_v41 = vld [vmem:[%s2621_s17 + $0x1b8] sm:$0xff]  ;;  %v405_v13 = vld [vmem:[%s2621_s17 + $0x268] sm:$0xff]  ;;  %v402_v23 = vld [vmem:[%s2621_s17 + $0x250] sm:$0xff] }
  0x77   : > { %1026 = vmatmul.mubr.bf16.vlgmr.msra.gmra.mxu1 %v458_v45  ;;  %872 = vmatprep.mubr.bf16.mxu0 %v461_v46  ;;  %v483_v45 = vpack.c.bf16 %v383_v41, %v379_v40  ;;  %v376_v46 = vld [vmem:[%s2621_s17 + $0x180] sm:$0xff]  ;;  %v403_v14 = vld [vmem:[%s2621_s17 + $0x258] sm:$0xff]  ;;  %v406_v24 = vld [vmem:[%s2621_s17 + $0x270] sm:$0xff] }
  0x78   : > { %1821 = vmatprep.mubr.msk.bf16.mxu1 %vm779_vm1, %v463_v49  ;;  %v378_v49 = vld [vmem:[%s2621_s17 + $0x190] sm:$0xff]  ;;  %2172 = vmatpush3.bf16.msra.mxu0 %v2308_v48  ;;  %v480_v56 = vpack.c.bf16 %v380_v47, %v376_v46  ;;  %v407_v15 = vld [vmem:[%s2621_s17 + $0x278] sm:$0xff]  ;;  %v409_v25 = vld [vmem:[%s2621_s17 + $0x288] sm:$0xff] }
  0x79   : > { %2173 = vmatprep.subr.bf16.mxu0 %v2309_v53  ;;  %v482_v57 = vpack.c.bf16 %v382_v50, %v378_v49  ;;  %v413_v26 = vld [vmem:[%s2621_s17 + $0x2a8] sm:$0xff]  ;;  %v411_v27 = vld [vmem:[%s2621_s17 + $0x298] sm:$0xff]  ;;  %v408_v35 = vld [vmem:[%s2621_s17 + $0x280] sm:$0xff] }
  0x7a   : > { %v415_v28 = vld [vmem:[%s2621_s17 + $0x2b8] sm:$0xff]  ;;  %v412_v36 = vld [vmem:[%s2621_s17 + $0x2a0] sm:$0xff]  ;;  %v410_v37 = vld [vmem:[%s2621_s17 + $0x290] sm:$0xff] }
  0x7b   : > { %v2312_v34 = vld [vmem:[%s2998_s3 + $0x18] sm:$0xff]   ;;  %v414_v38 = vld [vmem:[%s2621_s17 + $0x2b0] sm:$0xff]  ;;  %v417_v39 = vld [vmem:[%s2621_s17 + $0x2c8] sm:$0xff] }
  0x7c   : > { %2174 = vmatpush3.bf16.msra.mxu0 %v2309_v53  ;;  %v421_v40 = vld [vmem:[%s2621_s17 + $0x2e8] sm:$0xff]  ;;  %v419_v41 = vld [vmem:[%s2621_s17 + $0x2d8] sm:$0xff]  ;;  %v416_v49 = vld [vmem:[%s2621_s17 + $0x2c0] sm:$0xff] }
  0x7d   : > { %v501_v46 = vpack.c.bf16 %v421_v40, %v417_v39  ;;  %v2314_v48 = vld [vmem:[%s2998_s3 + $0x8] sm:$0xff]   ;;  %v420_v50 = vld [vmem:[%s2621_s17 + $0x2e0] sm:$0xff] }
  0x7e   : > { %873 = vmatmul.mubr.bf16.gmra.mxu0 %v460_v58  ;;  %v485_v58 = vpack.c.bf16 %v389_v52, %v385_v51  ;;  %v418_v51 = vld [vmem:[%s2621_s17 + $0x2d0] sm:$0xff]  ;;  %v425_v53 = vld [vmem:[%s2621_s17 + $0x308] sm:$0xff]  ;;  %v424_v62 = vld [vmem:[%s2621_s17 + $0x300] sm:$0xff] }
  0x7f   : > { %1034 = vmatmul.mubr.bf16.gmra.mxu1 %v462_v59  ;;  %880 = vmatprep.mubr.bf16.mxu0 %v465_v60  ;;  %v487_v59 = vpack.c.bf16 %v391_v55, %v387_v54  ;;  %v384_v60 = vld [vmem:[%s2621_s17 + $0x1c0] sm:$0xff]  ;;  %v422_v52 = vld [vmem:[%s2621_s17 + $0x2f0] sm:$0xff]  ;;  %v429_v54 = vld [vmem:[%s2621_s17 + $0x328] sm:$0xff] }
  0x80   : > { %1822 = vmatprep.mubr.msk.bf16.mxu1 %vm779_vm1, %v467_v61  ;;  %v388_v61 = vld [vmem:[%s2621_s17 + $0x1e0] sm:$0xff]  ;;  %v427_v55 = vld [vmem:[%s2621_s17 + $0x318] sm:$0xff] }
  0x81   : > { %v484_v4 = vpack.c.bf16 %v388_v61, %v384_v60  ;;  %v505_v60 = vpack.c.bf16 %v429_v54, %v425_v53  ;;  %v428_v63 = vld [vmem:[%s2621_s17 + $0x320] sm:$0xff] }
  0x82   : > { %v432_v10 = vld [vmem:[%s2621_s17 + $0x340] sm:$0xff] }
  0x83   : > { %v436_v11 = vld [vmem:[%s2621_s17 + $0x360] sm:$0xff] }
  0x86   : > { %881 = vmatmul.mubr.bf16.gmra.mxu0 %v464_v6  ;;  %v489_v6 = vpack.c.bf16 %v397_v1, %v393_v0  ;;  %v426_v0 = vld [vmem:[%s2621_s17 + $0x310] sm:$0xff] }
  0x87   : > { %1042 = vmatmul.mubr.bf16.gmra.mxu1 %v466_v7  ;;  %888 = vmatprep.mubr.bf16.mxu0 %v469_v8  ;;  %v491_v7 = vpack.c.bf16 %v399_v3, %v395_v2  ;;  %v392_v8 = vld [vmem:[%s2621_s17 + $0x200] sm:$0xff]  ;;  %v430_v1 = vld [vmem:[%s2621_s17 + $0x330] sm:$0xff]  ;;  %v433_v2 = vld [vmem:[%s2621_s17 + $0x348] sm:$0xff] }
  0x88   : > { %1823 = vmatprep.mubr.msk.bf16.mxu1 %vm779_vm1, %v471_v9  ;;  %v396_v9 = vld [vmem:[%s2621_s17 + $0x220] sm:$0xff]  ;;  %v437_v3 = vld [vmem:[%s2621_s17 + $0x368] sm:$0xff] }
  0x89   : > { %v488_v16 = vpack.c.bf16 %v396_v9, %v392_v8  ;;  %v509_v8 = vpack.c.bf16 %v437_v3, %v433_v2 }
  0x8e   : > { %889 = vmatmul.mubr.bf16.gmra.mxu0 %v468_v18  ;;  %v493_v18 = vpack.c.bf16 %v405_v13, %v401_v12  ;;  %v434_v12 = vld [vmem:[%s2621_s17 + $0x350] sm:$0xff] }
  0x8f   : > { %1050 = vmatmul.mubr.bf16.gmra.mxu1 %v470_v19  ;;  %896 = vmatprep.mubr.bf16.mxu0 %v473_v20  ;;  %v495_v19 = vpack.c.bf16 %v407_v15, %v403_v14  ;;  %v2310_v20 = vld [vmem:[%s2998_s3 + $0x28] sm:$0xff]   ;;  %v438_v13 = vld [vmem:[%s2621_s17 + $0x370] sm:$0xff] }
  0x90   : > { %1824 = vmatprep.mubr.msk.bf16.mxu1 %vm779_vm1, %v475_v21  ;;  %v400_v21 = vld [vmem:[%s2621_s17 + $0x240] sm:$0xff]  ;;  %2175 = vmatprep.subr.bf16.mxu0 %v2310_v20  ;;  %v441_v14 = vld [vmem:[%s2621_s17 + $0x388] sm:$0xff] }
  0x91   : > { %2176 = vmatpush3.bf16.msra.mxu0 %v2310_v20  ;;  %v492_v29 = vpack.c.bf16 %v404_v22, %v400_v21  ;;  %v445_v15 = vld [vmem:[%s2621_s17 + $0x3a8] sm:$0xff]  ;;  %v440_v22 = vld [vmem:[%s2621_s17 + $0x380] sm:$0xff] }
  0x92   : > { %v513_v20 = vpack.c.bf16 %v445_v15, %v441_v14 }
  0x96   : > { %897 = vmatmul.mubr.bf16.gmra.mxu0 %v472_v30  ;;  %v2311_v30 = vld [vmem:[%s2998_s3 + $0x20] sm:$0xff]  }
  0x97   : > { %1058 = vmatmul.mubr.bf16.gmra.mxu1 %v474_v31  ;;  %904 = vmatprep.mubr.bf16.mxu0 %v477_v32  ;;  %v494_v31 = vpack.c.bf16 %v406_v24, %v402_v23  ;;  %v497_v32 = vpack.c.bf16 %v413_v26, %v409_v25  ;;  %v444_v23 = vld [vmem:[%s2621_s17 + $0x3a0] sm:$0xff]  ;;  %v442_v24 = vld [vmem:[%s2621_s17 + $0x390] sm:$0xff]  ;;  %v449_v26 = vld [vmem:[%s2621_s17 + $0x3c8] sm:$0xff] }
  0x98   : > { %1825 = vmatprep.mubr.msk.bf16.mxu1 %vm779_vm1, %v479_v33  ;;  %v499_v33 = vpack.c.bf16 %v415_v28, %v411_v27  ;;  %2177 = vmatprep.subr.bf16.mxu0 %v2311_v30  ;;  %v446_v25 = vld [vmem:[%s2621_s17 + $0x3b0] sm:$0xff]  ;;  %v453_v27 = vld [vmem:[%s2621_s17 + $0x3e8] sm:$0xff]  ;;  %v451_v28 = vld [vmem:[%s2621_s17 + $0x3d8] sm:$0xff] }
  0x99   : > { %2178 = vmatpush3.bf16.msra.mxu0 %v2311_v30  ;;  %v512_v30 = vpack.c.bf16 %v444_v23, %v440_v22 }
  0x9a   : > { %2179 = vmatprep.subr.bf16.mxu0 %v2312_v34 }
  0x9d   : > { %2180 = vmatpush3.bf16.msra.mxu0 %v2312_v34  ;;  %v448_v34 = vld [vmem:[%s2621_s17 + $0x3c0] sm:$0xff] }
  0x9e   : > { %905 = vmatmul.mubr.bf16.gmra.mxu0 %v476_v42  ;;  %v423_v42 = vld [vmem:[%s2621_s17 + $0x2f8] sm:$0xff] }
  0x9f   : > { %1066 = vmatmul.mubr.bf16.gmra.mxu1 %v478_v43  ;;  %912 = vmatprep.mubr.bf16.mxu0 %v481_v44  ;;  %v496_v43 = vpack.c.bf16 %v412_v36, %v408_v35  ;;  %v2313_v44 = vld [vmem:[%s2998_s3 + $0x10] sm:$0xff]   ;;  %v503_v47 = vpack.c.bf16 %v423_v42, %v419_v41  ;;  %v452_v35 = vld [vmem:[%s2621_s17 + $0x3e0] sm:$0xff] }
  0xa0   : > { %1826 = vmatprep.mubr.msk.bf16.mxu1 %vm779_vm1, %v483_v45  ;;  %v498_v45 = vpack.c.bf16 %v414_v38, %v410_v37  ;;  %2181 = vmatprep.subr.bf16.mxu0 %v2313_v44  ;;  %v450_v36 = vld [vmem:[%s2621_s17 + $0x3d0] sm:$0xff]  ;;  %v516_v38 = vpack.c.bf16 %v452_v35, %v448_v34  ;;  %v2802_v42 = vld [vmem:[%s2997_s2] ss:$0 sm:$0xff] }
  0xa1   : > { %2182 = vmatpush3.bf16.msra.mxu0 %v2313_v44  ;;  %v454_v37 = vld [vmem:[%s2621_s17 + $0x3f0] sm:$0xff] }
  0xa2   : > { %2183 = vmatprep.subr.bf16.mxu0 %v2314_v48  ;;  %v518_v39 = vpack.c.bf16 %v454_v37, %v450_v36 }
  0xa5   : > { %2184 = vmatpush3.bf16.msra.mxu0 %v2314_v48 }
  0xa6   : > { %913 = vmatmul.mubr.bf16.gmra.mxu0 %v480_v56  ;;  %v431_v56 = vld [vmem:[%s2621_s17 + $0x338] sm:$0xff] }
  0xa7   : > { %1074 = vmatmul.mubr.bf16.gmra.mxu1 %v482_v57  ;;  %920 = vmatprep.mubr.bf16.mxu0 %v485_v58  ;;  %v500_v57 = vpack.c.bf16 %v420_v50, %v416_v49  ;;  %v2315_v58 = vld [vmem:[%s2998_s3] sm:$0xff]   ;;  %v507_v61 = vpack.c.bf16 %v431_v56, %v427_v55 }
  0xa8   : > { %1827 = vmatprep.mubr.msk.bf16.mxu1 %vm779_vm1, %v487_v59  ;;  %v502_v59 = vpack.c.bf16 %v422_v52, %v418_v51  ;;  %2185 = vmatprep.subr.bf16.mxu0 %v2315_v58 }
  0xa9   : > { %2186 = vmatpush3.bf16.msra.mxu0 %v2315_v58 }
  0xae   : > { %921 = vmatmul.mubr.bf16.gmra.mxu0 %v484_v4  ;;  %v435_v4 = vld [vmem:[%s2621_s17 + $0x358] sm:$0xff] }
  0xaf   : > { %1082 = vmatmul.mubr.bf16.gmra.mxu1 %v486_v5  ;;  %928 = vmatprep.mubr.bf16.mxu0 %v489_v6  ;;  %v439_v5 = vld [vmem:[%s2621_s17 + $0x378] sm:$0xff]  ;;  %v504_v6 = vpack.c.bf16 %v428_v63, %v424_v62 }
  0xb0   : > { %1828 = vmatprep.mubr.msk.bf16.mxu1 %vm779_vm1, %v491_v7  ;;  %v506_v7 = vpack.c.bf16 %v430_v1, %v426_v0  ;;  %v511_v9 = vpack.c.bf16 %v439_v5, %v435_v4 }
  0xb6   : > { %929 = vmatmul.mubr.bf16.gmra.mxu0 %v488_v16  ;;  %v443_v16 = vld [vmem:[%s2621_s17 + $0x398] sm:$0xff] }
  0xb7   : > { %1090 = vmatmul.mubr.bf16.gmra.mxu1 %v490_v17  ;;  %936 = vmatprep.mubr.bf16.mxu0 %v493_v18  ;;  %v447_v17 = vld [vmem:[%s2621_s17 + $0x3b8] sm:$0xff]  ;;  %v508_v18 = vpack.c.bf16 %v436_v11, %v432_v10 }
  0xb8   : > { %1829 = vmatprep.mubr.msk.bf16.mxu1 %vm779_vm1, %v495_v19  ;;  %v510_v19 = vpack.c.bf16 %v438_v13, %v434_v12  ;;  %v515_v21 = vpack.c.bf16 %v447_v17, %v443_v16 }
  0xbe   : > { %937 = vmatmul.mubr.bf16.gmra.mxu0 %v492_v29  ;;  %v455_v29 = vld [vmem:[%s2621_s17 + $0x3f8] sm:$0xff]  ;;  %s2380_s17 = sshll.u32 %s2453_s18, 4  ;;  %s2381_s17 = int_to_ptr.vmem [resolvable:$false] %s2380_s17 }
  0xbf   : > { %1098 = vmatmul.mubr.bf16.gmra.mxu1 %v494_v31  ;;  %944 = vmatprep.mubr.bf16.mxu0 %v497_v32  ;;  %v514_v31 = vpack.c.bf16 %v446_v25, %v442_v24  ;;  %v517_v32 = vpack.c.bf16 %v453_v27, %v449_v26  ;;  %s2382_s6 = scalar_lea.vmem %s2381_s17, 64  ;;  %p2383_p0 = scmp.lt.s32.totalorder %s1691_s24, %s2381_s17 }
  0xc0   : > { %1830 = vmatprep.mubr.msk.bf16.mxu1 %vm779_vm1, %v499_v33  ;;  %v519_v33 = vpack.c.bf16 %v455_v29, %v451_v28  ;;  %p2384_p7 = scmp.lt.s32.totalorder %s2382_s6, %s2376_s10 }
  0xc2   : > { %p2385_p3 = por %p2384_p7, %p2383_p0 }
  0xc4   : > { %p2386_p8 = pnand %p2385_p3, %p2379_p1 }
  0xc6   : > { %945 = vmatmul.mubr.bf16.gmra.mxu0 %v496_v43 }
  0xc7   : > { %1106 = vmatmul.mubr.bf16.gmra.mxu1 %v498_v45  ;;  %952 = vmatprep.mubr.bf16.mxu0 %v501_v46 }
  0xc8   : > { %1831 = vmatprep.mubr.msk.bf16.mxu1 %vm779_vm1, %v503_v47 }
  0xce   : > { %953 = vmatmul.mubr.bf16.gmra.mxu0 %v500_v57 }
  0xcf   : > { %1114 = vmatmul.mubr.bf16.gmra.mxu1 %v502_v59  ;;  %960 = vmatprep.mubr.bf16.mxu0 %v505_v60 }
  0xd0   : > { %1832 = vmatprep.mubr.msk.bf16.mxu1 %vm779_vm1, %v507_v61 }
  0xd6   : > { %961 = vmatmul.mubr.bf16.gmra.mxu0 %v504_v6 }
  0xd7   : > { %1122 = vmatmul.mubr.bf16.gmra.mxu1 %v506_v7  ;;  %968 = vmatprep.mubr.bf16.mxu0 %v509_v8 }
  0xd8   : > { %1833 = vmatprep.mubr.msk.bf16.mxu1 %vm779_vm1, %v511_v9 }
  0xde   : > { %969 = vmatmul.mubr.bf16.gmra.mxu0 %v508_v18 }
  0xdf   : > { %1130 = vmatmul.mubr.bf16.gmra.mxu1 %v510_v19  ;;  %976 = vmatprep.mubr.bf16.mxu0 %v513_v20 }
  0xe0   : > { %1834 = vmatprep.mubr.msk.bf16.mxu1 %vm779_vm1, %v515_v21 }
  0xe6   : > { %977 = vmatmul.mubr.bf16.gmra.mxu0 %v512_v30 }
  0xe7   : > { %1138 = vmatmul.mubr.bf16.gmra.mxu1 %v514_v31  ;;  %984 = vmatprep.mubr.bf16.mxu0 %v517_v32 }
  0xe8   : > { %1835 = vmatprep.mubr.msk.bf16.mxu1 %vm779_vm1, %v519_v33 }
  0xee   : > { %985 = vmatmul.mubr.bf16.gmra.mxu0 %v516_v38 }
  0xef   : > { %1146 = vmatmul.mubr.bf16.gmra.mxu1 %v518_v39 }
 0x136   : > { %v1905_v40 = vpop.f32.mrf.mxu0 }
 0x137   : > { %v2017_v41 = vpop.f32.mrf.mxu1 }
 0x138   : > { %v1906_v43 = vpop.f32.mrf.mxu0 }
 0x139   : > { %v1907_v44 = vadd.f32 %v1906_v43, %v1905_v40  ;;  %v2018_v45 = vpop.f32.mrf.mxu1 }
 0x13a   : > { %v1908_v46 = vpop.f32.mrf.mxu0  ;;  %v2019_v50 = vadd.f32 %v2018_v45, %v2017_v41 }
 0x13b   : > { %v867_v47 = vadd.f32 %v1907_v44, %v2802_v42  ;;  %v2020_v48 = vpop.f32.mrf.mxu1 }
 0x13c   : > { %v1909_v49 = vpop.f32.mrf.mxu0 }
 0x13d   : > { %v1910_v51 = vadd.f32 %v1909_v49, %v1908_v46  ;;  %v2021_v52 = vpop.f32.mrf.mxu1  ;;  %v1028_v54 = vadd.f32 %v2019_v50, %v867_v47 }
 0x13e   : > { %v1911_v53 = vpop.f32.mrf.mxu0  ;;  %v2022_v56 = vadd.f32 %v2021_v52, %v2020_v48 }
 0x13f   : > { %v870_v55 = vadd.f32 %v1910_v51, %v2802_v42  ;;  %v2023_v57 = vpop.f32.mrf.mxu1  ;;  %v1154_v63 = vmax.f32 %v1028_v54, 0.0 }
 0x140   : > { %v1912_v58 = vpop.f32.mrf.mxu0 }
 0x141   : > { %v1031_v59 = vadd.f32 %v2022_v56, %v870_v55  ;;  %v1913_v60 = vadd.f32 %v1912_v58, %v1911_v53  ;;  %v2024_v61 = vpop.f32.mrf.mxu1 }
 0x142   : > { %v1914_v62 = vpop.f32.mrf.mxu0  ;;  %v2025_v4 = vadd.f32 %v2024_v61, %v2023_v57 }
 0x143   : > { %v1155_v0 = vmax.f32 %v1031_v59, 0.0  ;;  %v875_v1 = vadd.f32 %v1913_v60, %v2802_v42  ;;  %v2026_v2 = vpop.f32.mrf.mxu1 }
 0x144   : > { %v1915_v3 = vpop.f32.mrf.mxu0 }
 0x145   : > { %v1916_v5 = vadd.f32 %v1915_v3, %v1914_v62  ;;  %v2027_v6 = vpop.f32.mrf.mxu1  ;;  %v1186_v7 = vpack.c.bf16 %v1155_v0, %v1154_v63  ;;  %v1036_v9 = vadd.f32 %v2025_v4, %v875_v1 }
 0x146   : > { %v1917_v8 = vpop.f32.mrf.mxu0  ;;  %v2028_v11 = vadd.f32 %v2027_v6, %v2026_v2 }
 0x147   : > { %v878_v10 = vadd.f32 %v1916_v5, %v2802_v42  ;;  %v2029_v12 = vpop.f32.mrf.mxu1  ;;  %2187 = vmatprep.mubr.bf16.mxu0 %v1186_v7  ;;  %v1156_v18 = vmax.f32 %v1036_v9, 0.0 }
 0x148   : > { %v1918_v13 = vpop.f32.mrf.mxu0 }
 0x149   : > { %v1039_v14 = vadd.f32 %v2028_v11, %v878_v10  ;;  %v1919_v15 = vadd.f32 %v1918_v13, %v1917_v8  ;;  %v2030_v16 = vpop.f32.mrf.mxu1 }
 0x14a   : > { %v1920_v17 = vpop.f32.mrf.mxu0  ;;  %v2031_v24 = vadd.f32 %v2030_v16, %v2029_v12 }
 0x14b   : > { %v1157_v19 = vmax.f32 %v1039_v14, 0.0  ;;  %v883_v20 = vadd.f32 %v1919_v15, %v2802_v42  ;;  %v2032_v21 = vpop.f32.mrf.mxu1 }
 0x14c   : > { %v1921_v22 = vpop.f32.mrf.mxu0 }
 0x14d   : > { %v1187_v23 = vpack.c.bf16 %v1157_v19, %v1156_v18  ;;  %v1922_v25 = vadd.f32 %v1921_v22, %v1920_v17  ;;  %v2033_v26 = vpop.f32.mrf.mxu1  ;;  %v1044_v28 = vadd.f32 %v2031_v24, %v883_v20 }
 0x14e   : > { %v1923_v27 = vpop.f32.mrf.mxu0  ;;  %v2034_v30 = vadd.f32 %v2033_v26, %v2032_v21 }
 0x14f   : > { %v886_v29 = vadd.f32 %v1922_v25, %v2802_v42  ;;  %v2035_v31 = vpop.f32.mrf.mxu1  ;;  %2188 = vmatmul.mubr.bf16.vlgmr.msra.gmra.mxu0 %v1187_v23  ;;  %v1158_v37 = vmax.f32 %v1044_v28, 0.0 }
 0x150   : > { %v1924_v32 = vpop.f32.mrf.mxu0 }
 0x151   : > { %v1047_v33 = vadd.f32 %v2034_v30, %v886_v29  ;;  %v1925_v34 = vadd.f32 %v1924_v32, %v1923_v27  ;;  %v2036_v35 = vpop.f32.mrf.mxu1 }
 0x152   : > { %v1926_v36 = vpop.f32.mrf.mxu0  ;;  %v2037_v43 = vadd.f32 %v2036_v35, %v2035_v31 }
 0x153   : > { %v1159_v38 = vmax.f32 %v1047_v33, 0.0  ;;  %v891_v39 = vadd.f32 %v1925_v34, %v2802_v42  ;;  %v2038_v40 = vpop.f32.mrf.mxu1 }
 0x154   : > { %v1927_v41 = vpop.f32.mrf.mxu0 }
 0x155   : > { %v1928_v44 = vadd.f32 %v1927_v41, %v1926_v36  ;;  %v2039_v45 = vpop.f32.mrf.mxu1  ;;  %v1188_v46 = vpack.c.bf16 %v1159_v38, %v1158_v37  ;;  %v1052_v48 = vadd.f32 %v2037_v43, %v891_v39 }
 0x156   : > { %v1929_v47 = vpop.f32.mrf.mxu0  ;;  %v2040_v50 = vadd.f32 %v2039_v45, %v2038_v40 }
 0x157   : > { %v894_v49 = vadd.f32 %v1928_v44, %v2802_v42  ;;  %v2041_v51 = vpop.f32.mrf.mxu1  ;;  %2191 = vmatprep.mubr.bf16.mxu0 %v1188_v46  ;;  %v1160_v57 = vmax.f32 %v1052_v48, 0.0 }
 0x158   : > { %v1930_v52 = vpop.f32.mrf.mxu0 }
 0x159   : > { %v1055_v53 = vadd.f32 %v2040_v50, %v894_v49  ;;  %v1931_v54 = vadd.f32 %v1930_v52, %v1929_v47  ;;  %v2042_v55 = vpop.f32.mrf.mxu1 }
 0x15a   : > { %v1932_v56 = vpop.f32.mrf.mxu0  ;;  %v2043_v62 = vadd.f32 %v2042_v55, %v2041_v51 }
 0x15b   : > { %v1161_v58 = vmax.f32 %v1055_v53, 0.0  ;;  %v899_v59 = vadd.f32 %v1931_v54, %v2802_v42  ;;  %v2044_v60 = vpop.f32.mrf.mxu1 }
 0x15c   : > { %v1933_v61 = vpop.f32.mrf.mxu0 }
 0x15d   : > { %v1934_v63 = vadd.f32 %v1933_v61, %v1932_v56  ;;  %v2045_v0 = vpop.f32.mrf.mxu1  ;;  %v1189_v1 = vpack.c.bf16 %v1161_v58, %v1160_v57  ;;  %v1060_v3 = vadd.f32 %v2043_v62, %v899_v59 }
 0x15e   : > { %v1935_v2 = vpop.f32.mrf.mxu0  ;;  %v2046_v5 = vadd.f32 %v2045_v0, %v2044_v60 }
 0x15f   : > { %v902_v4 = vadd.f32 %v1934_v63, %v2802_v42  ;;  %v2047_v6 = vpop.f32.mrf.mxu1  ;;  %2192 = vmatmul.mubr.bf16.gmra.mxu0 %v1189_v1  ;;  %v1162_v12 = vmax.f32 %v1060_v3, 0.0 }
 0x160   : > { %v1936_v7 = vpop.f32.mrf.mxu0 }
 0x161   : > { %v1063_v8 = vadd.f32 %v2046_v5, %v902_v4  ;;  %v1937_v9 = vadd.f32 %v1936_v7, %v1935_v2  ;;  %v2048_v10 = vpop.f32.mrf.mxu1 }
 0x162   : > { %v1938_v11 = vpop.f32.mrf.mxu0  ;;  %v2049_v17 = vadd.f32 %v2048_v10, %v2047_v6 }
 0x163   : > { %v1163_v13 = vmax.f32 %v1063_v8, 0.0  ;;  %v907_v14 = vadd.f32 %v1937_v9, %v2802_v42  ;;  %v2050_v15 = vpop.f32.mrf.mxu1 }
 0x164   : > { %v1939_v16 = vpop.f32.mrf.mxu0 }
 0x165   : > { %v1940_v18 = vadd.f32 %v1939_v16, %v1938_v11  ;;  %v2051_v19 = vpop.f32.mrf.mxu1  ;;  %v1190_v20 = vpack.c.bf16 %v1163_v13, %v1162_v12  ;;  %v1068_v22 = vadd.f32 %v2049_v17, %v907_v14 }
 0x166   : > { %v1941_v21 = vpop.f32.mrf.mxu0  ;;  %v2052_v24 = vadd.f32 %v2051_v19, %v2050_v15 }
 0x167   : > { %v910_v23 = vadd.f32 %v1940_v18, %v2802_v42  ;;  %v2053_v25 = vpop.f32.mrf.mxu1  ;;  %2195 = vmatprep.mubr.bf16.mxu0 %v1190_v20  ;;  %v1164_v31 = vmax.f32 %v1068_v22, 0.0 }
 0x168   : > { %v1942_v26 = vpop.f32.mrf.mxu0 }
 0x169   : > { %v1071_v27 = vadd.f32 %v2052_v24, %v910_v23  ;;  %v1943_v28 = vadd.f32 %v1942_v26, %v1941_v21  ;;  %v2054_v29 = vpop.f32.mrf.mxu1 }
 0x16a   : > { %v1944_v30 = vpop.f32.mrf.mxu0  ;;  %v2055_v36 = vadd.f32 %v2054_v29, %v2053_v25 }
 0x16b   : > { %v1165_v32 = vmax.f32 %v1071_v27, 0.0  ;;  %v915_v33 = vadd.f32 %v1943_v28, %v2802_v42  ;;  %v2056_v34 = vpop.f32.mrf.mxu1 }
 0x16c   : > { %v1945_v35 = vpop.f32.mrf.mxu0 }
 0x16d   : > { %v1946_v37 = vadd.f32 %v1945_v35, %v1944_v30  ;;  %v2057_v38 = vpop.f32.mrf.mxu1  ;;  %v1191_v39 = vpack.c.bf16 %v1165_v32, %v1164_v31  ;;  %v1076_v41 = vadd.f32 %v2055_v36, %v915_v33 }
 0x16e   : > { %v1947_v40 = vpop.f32.mrf.mxu0  ;;  %v2058_v44 = vadd.f32 %v2057_v38, %v2056_v34 }
 0x16f   : > { %v918_v43 = vadd.f32 %v1946_v37, %v2802_v42  ;;  %v2059_v45 = vpop.f32.mrf.mxu1  ;;  %2196 = vmatmul.mubr.bf16.gmra.mxu0 %v1191_v39  ;;  %v1166_v51 = vmax.f32 %v1076_v41, 0.0 }
 0x170   : > { %v1948_v46 = vpop.f32.mrf.mxu0 }
 0x171   : > { %v1079_v47 = vadd.f32 %v2058_v44, %v918_v43  ;;  %v1949_v48 = vadd.f32 %v1948_v46, %v1947_v40  ;;  %v2060_v49 = vpop.f32.mrf.mxu1 }
 0x172   : > { %v1950_v50 = vpop.f32.mrf.mxu0  ;;  %v2061_v56 = vadd.f32 %v2060_v49, %v2059_v45 }
 0x173   : > { %v1167_v52 = vmax.f32 %v1079_v47, 0.0  ;;  %v923_v53 = vadd.f32 %v1949_v48, %v2802_v42  ;;  %v2062_v54 = vpop.f32.mrf.mxu1 }
 0x174   : > { %v1951_v55 = vpop.f32.mrf.mxu0 }
 0x175   : > { %v1952_v57 = vadd.f32 %v1951_v55, %v1950_v50  ;;  %v2063_v58 = vpop.f32.mrf.mxu1  ;;  %v1192_v59 = vpack.c.bf16 %v1167_v52, %v1166_v51  ;;  %v1084_v61 = vadd.f32 %v2061_v56, %v923_v53 }
 0x176   : > { %v1953_v60 = vpop.f32.mrf.mxu0  ;;  %v2064_v63 = vadd.f32 %v2063_v58, %v2062_v54 }
 0x177   : > { %v926_v62 = vadd.f32 %v1952_v57, %v2802_v42  ;;  %v2065_v0 = vpop.f32.mrf.mxu1  ;;  %2199 = vmatprep.mubr.bf16.mxu0 %v1192_v59  ;;  %v1168_v6 = vmax.f32 %v1084_v61, 0.0 }
 0x178   : > { %v1954_v1 = vpop.f32.mrf.mxu0 }
 0x179   : > { %v1087_v2 = vadd.f32 %v2064_v63, %v926_v62  ;;  %v1955_v3 = vadd.f32 %v1954_v1, %v1953_v60  ;;  %v2066_v4 = vpop.f32.mrf.mxu1 }
 0x17a   : > { %v1956_v5 = vpop.f32.mrf.mxu0  ;;  %v2067_v11 = vadd.f32 %v2066_v4, %v2065_v0 }
 0x17b   : > { %v1169_v7 = vmax.f32 %v1087_v2, 0.0  ;;  %v931_v8 = vadd.f32 %v1955_v3, %v2802_v42  ;;  %v2068_v9 = vpop.f32.mrf.mxu1 }
 0x17c   : > { %v1957_v10 = vpop.f32.mrf.mxu0 }
 0x17d   : > { %v1958_v12 = vadd.f32 %v1957_v10, %v1956_v5  ;;  %v2069_v13 = vpop.f32.mrf.mxu1  ;;  %v1193_v14 = vpack.c.bf16 %v1169_v7, %v1168_v6  ;;  %v1092_v16 = vadd.f32 %v2067_v11, %v931_v8 }
 0x17e   : > { %v1959_v15 = vpop.f32.mrf.mxu0  ;;  %v2070_v18 = vadd.f32 %v2069_v13, %v2068_v9 }
 0x17f   : > { %v934_v17 = vadd.f32 %v1958_v12, %v2802_v42  ;;  %v2071_v19 = vpop.f32.mrf.mxu1  ;;  %2200 = vmatmul.mubr.bf16.gmra.mxu0 %v1193_v14  ;;  %v1170_v25 = vmax.f32 %v1092_v16, 0.0 }
 0x180   : > { %v1960_v20 = vpop.f32.mrf.mxu0 }
 0x181   : > { %v1095_v21 = vadd.f32 %v2070_v18, %v934_v17  ;;  %v1961_v22 = vadd.f32 %v1960_v20, %v1959_v15  ;;  %v2072_v23 = vpop.f32.mrf.mxu1 }
 0x182   : > { %v1962_v24 = vpop.f32.mrf.mxu0  ;;  %v2073_v30 = vadd.f32 %v2072_v23, %v2071_v19 }
 0x183   : > { %v1171_v26 = vmax.f32 %v1095_v21, 0.0  ;;  %v939_v27 = vadd.f32 %v1961_v22, %v2802_v42  ;;  %v2074_v28 = vpop.f32.mrf.mxu1 }
 0x184   : > { %v1963_v29 = vpop.f32.mrf.mxu0 }
 0x185   : > { %v1964_v31 = vadd.f32 %v1963_v29, %v1962_v24  ;;  %v2075_v32 = vpop.f32.mrf.mxu1  ;;  %v1194_v33 = vpack.c.bf16 %v1171_v26, %v1170_v25  ;;  %v1100_v35 = vadd.f32 %v2073_v30, %v939_v27 }
 0x186   : > { %v1965_v34 = vpop.f32.mrf.mxu0  ;;  %v2076_v37 = vadd.f32 %v2075_v32, %v2074_v28 }
 0x187   : > { %v942_v36 = vadd.f32 %v1964_v31, %v2802_v42  ;;  %v2077_v38 = vpop.f32.mrf.mxu1  ;;  %2203 = vmatprep.mubr.bf16.mxu0 %v1194_v33  ;;  %v1172_v45 = vmax.f32 %v1100_v35, 0.0 }
 0x188   : > { %v1966_v39 = vpop.f32.mrf.mxu0 }
 0x189   : > { %v1103_v40 = vadd.f32 %v2076_v37, %v942_v36  ;;  %v1967_v41 = vadd.f32 %v1966_v39, %v1965_v34  ;;  %v2078_v43 = vpop.f32.mrf.mxu1 }
 0x18a   : > { %v1968_v44 = vpop.f32.mrf.mxu0  ;;  %v2079_v50 = vadd.f32 %v2078_v43, %v2077_v38 }
 0x18b   : > { %v1173_v46 = vmax.f32 %v1103_v40, 0.0  ;;  %v947_v47 = vadd.f32 %v1967_v41, %v2802_v42  ;;  %v2080_v48 = vpop.f32.mrf.mxu1 }
 0x18c   : > { %v1969_v49 = vpop.f32.mrf.mxu0 }
 0x18d   : > { %v1970_v51 = vadd.f32 %v1969_v49, %v1968_v44  ;;  %v2081_v52 = vpop.f32.mrf.mxu1  ;;  %v1195_v53 = vpack.c.bf16 %v1173_v46, %v1172_v45  ;;  %v1108_v55 = vadd.f32 %v2079_v50, %v947_v47 }
 0x18e   : > { %v1971_v54 = vpop.f32.mrf.mxu0  ;;  %v2082_v57 = vadd.f32 %v2081_v52, %v2080_v48 }
 0x18f   : > { %v950_v56 = vadd.f32 %v1970_v51, %v2802_v42  ;;  %v2083_v58 = vpop.f32.mrf.mxu1  ;;  %2204 = vmatmul.mubr.bf16.gmra.mxu0 %v1195_v53  ;;  %v1174_v0 = vmax.f32 %v1108_v55, 0.0 }
 0x190   : > { %v1972_v59 = vpop.f32.mrf.mxu0 }
 0x191   : > { %v1111_v60 = vadd.f32 %v2082_v57, %v950_v56  ;;  %v1973_v61 = vadd.f32 %v1972_v59, %v1971_v54  ;;  %v2084_v62 = vpop.f32.mrf.mxu1 }
 0x192   : > { %v1974_v63 = vpop.f32.mrf.mxu0  ;;  %v2085_v5 = vadd.f32 %v2084_v62, %v2083_v58 }
 0x193   : > { %v1175_v1 = vmax.f32 %v1111_v60, 0.0  ;;  %v955_v2 = vadd.f32 %v1973_v61, %v2802_v42  ;;  %v2086_v3 = vpop.f32.mrf.mxu1 }
 0x194   : > { %v1975_v4 = vpop.f32.mrf.mxu0 }
 0x195   : > { %v1976_v6 = vadd.f32 %v1975_v4, %v1974_v63  ;;  %v2087_v7 = vpop.f32.mrf.mxu1  ;;  %v1196_v8 = vpack.c.bf16 %v1175_v1, %v1174_v0  ;;  %v1116_v10 = vadd.f32 %v2085_v5, %v955_v2 }
 0x196   : > { %v1977_v9 = vpop.f32.mrf.mxu0  ;;  %v2088_v12 = vadd.f32 %v2087_v7, %v2086_v3 }
 0x197   : > { %v958_v11 = vadd.f32 %v1976_v6, %v2802_v42  ;;  %v2089_v13 = vpop.f32.mrf.mxu1  ;;  %2207 = vmatprep.mubr.bf16.mxu0 %v1196_v8  ;;  %v1176_v19 = vmax.f32 %v1116_v10, 0.0 }
 0x198   : > { %v1978_v14 = vpop.f32.mrf.mxu0 }
 0x199   : > { %v1119_v15 = vadd.f32 %v2088_v12, %v958_v11  ;;  %v1979_v16 = vadd.f32 %v1978_v14, %v1977_v9  ;;  %v2090_v17 = vpop.f32.mrf.mxu1 }
 0x19a   : > { %v1980_v18 = vpop.f32.mrf.mxu0  ;;  %v2091_v24 = vadd.f32 %v2090_v17, %v2089_v13 }
 0x19b   : > { %v1177_v20 = vmax.f32 %v1119_v15, 0.0  ;;  %v963_v21 = vadd.f32 %v1979_v16, %v2802_v42  ;;  %v2092_v22 = vpop.f32.mrf.mxu1 }
 0x19c   : > { %v1981_v23 = vpop.f32.mrf.mxu0 }
 0x19d   : > { %v1982_v25 = vadd.f32 %v1981_v23, %v1980_v18  ;;  %v2093_v26 = vpop.f32.mrf.mxu1  ;;  %v1197_v27 = vpack.c.bf16 %v1177_v20, %v1176_v19  ;;  %v1124_v29 = vadd.f32 %v2091_v24, %v963_v21 }
 0x19e   : > { %v1983_v28 = vpop.f32.mrf.mxu0  ;;  %v2094_v31 = vadd.f32 %v2093_v26, %v2092_v22 }
 0x19f   : > { %v966_v30 = vadd.f32 %v1982_v25, %v2802_v42  ;;  %v2095_v32 = vpop.f32.mrf.mxu1  ;;  %2208 = vmatmul.mubr.bf16.gmra.mxu0 %v1197_v27  ;;  %v1178_v38 = vmax.f32 %v1124_v29, 0.0 }
 0x1a0   : > { %v1984_v33 = vpop.f32.mrf.mxu0 }
 0x1a1   : > { %v1127_v34 = vadd.f32 %v2094_v31, %v966_v30  ;;  %v1985_v35 = vadd.f32 %v1984_v33, %v1983_v28  ;;  %v2096_v36 = vpop.f32.mrf.mxu1 }
 0x1a2   : > { %v1986_v37 = vpop.f32.mrf.mxu0  ;;  %v2097_v44 = vadd.f32 %v2096_v36, %v2095_v32 }
 0x1a3   : > { %v1179_v39 = vmax.f32 %v1127_v34, 0.0  ;;  %v971_v40 = vadd.f32 %v1985_v35, %v2802_v42  ;;  %v2098_v41 = vpop.f32.mrf.mxu1 }
 0x1a4   : > { %v1987_v43 = vpop.f32.mrf.mxu0 }
 0x1a5   : > { %v1988_v45 = vadd.f32 %v1987_v43, %v1986_v37  ;;  %v2099_v46 = vpop.f32.mrf.mxu1  ;;  %v1198_v47 = vpack.c.bf16 %v1179_v39, %v1178_v38  ;;  %v1132_v49 = vadd.f32 %v2097_v44, %v971_v40  ;;  %v2857_v40 = vld [vmem:[%s3000_s5] sm:$0x1] }
 0x1a6   : > { %v1989_v48 = vpop.f32.mrf.mxu0  ;;  %v2100_v51 = vadd.f32 %v2099_v46, %v2098_v41  ;;  %2169 = vmatprep.mubr.msk.f32.mxu1 %vm1469_vm2, %v2857_v40 }
 0x1a7   : > { %v974_v50 = vadd.f32 %v1988_v45, %v2802_v42  ;;  %v2101_v52 = vpop.f32.mrf.mxu1  ;;  %2211 = vmatprep.mubr.bf16.mxu0 %v1198_v47  ;;  %v1180_v58 = vmax.f32 %v1132_v49, 0.0 }
 0x1a8   : > { %v1990_v53 = vpop.f32.mrf.mxu0 }
 0x1a9   : > { %v1135_v54 = vadd.f32 %v2100_v51, %v974_v50  ;;  %v1991_v55 = vadd.f32 %v1990_v53, %v1989_v48  ;;  %v2102_v56 = vpop.f32.mrf.mxu1 }
 0x1aa   : > { %v1992_v57 = vpop.f32.mrf.mxu0  ;;  %v2103_v63 = vadd.f32 %v2102_v56, %v2101_v52 }
 0x1ab   : > { %v1181_v59 = vmax.f32 %v1135_v54, 0.0  ;;  %v979_v60 = vadd.f32 %v1991_v55, %v2802_v42  ;;  %v2104_v61 = vpop.f32.mrf.mxu1 }
 0x1ac   : > { %v1993_v62 = vpop.f32.mrf.mxu0 }
 0x1ad   : > { %v1994_v0 = vadd.f32 %v1993_v62, %v1992_v57  ;;  %v2105_v1 = vpop.f32.mrf.mxu1  ;;  %v1199_v2 = vpack.c.bf16 %v1181_v59, %v1180_v58  ;;  %v1140_v4 = vadd.f32 %v2103_v63, %v979_v60  ;;  %v2876_v60 = vld [vmem:[%s2999_s4] ss:$0 sm:$0xff] }
 0x1ae   : > { %v1995_v3 = vpop.f32.mrf.mxu0  ;;  %v2106_v6 = vadd.f32 %v2105_v1, %v2104_v61 }
 0x1af   : > { %v982_v5 = vadd.f32 %v1994_v0, %v2802_v42  ;;  %v2107_v7 = vpop.f32.mrf.mxu1  ;;  %2212 = vmatmul.mubr.bf16.gmra.mxu0 %v1199_v2  ;;  %v1182_v13 = vmax.f32 %v1140_v4, 0.0 }
 0x1b0   : > { %v1996_v8 = vpop.f32.mrf.mxu0 }
 0x1b1   : > { %v1143_v9 = vadd.f32 %v2106_v6, %v982_v5  ;;  %v1997_v10 = vadd.f32 %v1996_v8, %v1995_v3  ;;  %v2108_v11 = vpop.f32.mrf.mxu1 }
 0x1b2   : > { %v1998_v12 = vpop.f32.mrf.mxu0  ;;  %v2109_v18 = vadd.f32 %v2108_v11, %v2107_v7 }
 0x1b3   : > { %v1183_v14 = vmax.f32 %v1143_v9, 0.0  ;;  %v987_v15 = vadd.f32 %v1997_v10, %v2802_v42  ;;  %v2110_v16 = vpop.f32.mrf.mxu1 }
 0x1b4   : > { %v1999_v17 = vpop.f32.mrf.mxu0 }
 0x1b5   : > { %v2000_v19 = vadd.f32 %v1999_v17, %v1998_v12  ;;  %v2111_v20 = vpop.f32.mrf.mxu1  ;;  %v1200_v21 = vpack.c.bf16 %v1183_v14, %v1182_v13  ;;  %v1148_v22 = vadd.f32 %v2109_v18, %v987_v15 }
 0x1b6   : > { %v2112_v24 = vadd.f32 %v2111_v20, %v2110_v16 }
 0x1b7   : > { %v990_v23 = vadd.f32 %v2000_v19, %v2802_v42  ;;  %2215 = vmatprep.mubr.bf16.mxu0 %v1200_v21  ;;  %v1184_v26 = vmax.f32 %v1148_v22, 0.0 }
 0x1b9   : > { %v1151_v25 = vadd.f32 %v2112_v24, %v990_v23 }
 0x1bb   : > { %v1185_v27 = vmax.f32 %v1151_v25, 0.0 }
 0x1bd   : > { %v1201_v28 = vpack.c.bf16 %v1185_v27, %v1184_v26 }
 0x1bf   : > { %2216 = vmatmul.mubr.bf16.gmra.mxu0 %v1201_v28 }
 0x20f   : > { %v2836_v29 = vpop.f32.mrf.mxu0 }
 0x211   : > { %v2838_v30 = vpop.f32.mrf.mxu0 }
 0x213   : > { %v2840_v31 = vpop.f32.mrf.mxu0 }
 0x215   : > { %v2842_v32 = vpop.f32.mrf.mxu0 }
 0x21f   : > { %v2844_v33 = vpop.f32.mrf.mxu0 }
 0x221   : > { %v2846_v34 = vpop.f32.mrf.mxu0 }
 0x223   : > { %v2848_v42 = vpop.f32.mrf.mxu0 }
 0x225   : > { %v2850_v35 = vpop.f32.mrf.mxu0 }
 0x22f   : > { %v2197_v36 = vpop.f32.mrf.mxu0 }
 0x230   : > { %v1348_v19 = vadd.f32 %v2197_v36, %v2876_v60 }
 0x231   : > { %v2852_v37 = vpop.f32.mrf.mxu0 }
 0x232   : > { %v1444_v23 = vmax.f32 %v1348_v19, 0.0  ;;  %v1340_v27 = vadd.f32 %v2876_v60, %v2852_v37  ;;  %v1332_v37 = vadd.f32 %v2844_v33, %v2876_v60  ;;  %v1324_v33 = vadd.f32 %v2876_v60, %v2846_v34 }
 0x233   : > { %v2198_v38 = vpop.f32.mrf.mxu0  ;;  %v1316_v34 = vadd.f32 %v2836_v29, %v2876_v60  ;;  %v1308_v29 = vadd.f32 %v2876_v60, %v2838_v30 }
 0x234   : > { %v1351_v15 = vadd.f32 %v2198_v38, %v2876_v60 }
 0x235   : > { %v1342_v39 = vpop.f32.mrf.mxu0 }
 0x236   : > { %v1445_v20 = vmax.f32 %v1351_v15, 0.0  ;;  %v1343_v24 = vadd.f32 %v2876_v60, %v1342_v39  ;;  %v1335_v39 = vadd.f32 %v2848_v42, %v2876_v60  ;;  %v1440_v42 = vmax.f32 %v1332_v37, 0.0 }
 0x238   : > { %v1443_v28 = vmax.f32 %v1343_v24, 0.0 }
 0x23f   : > { %v2201_v41 = vpop.f32.mrf.mxu0 }
 0x240   : > { %v1364_v3 = vadd.f32 %v2201_v41, %v2876_v60  ;;  %v1442_v41 = vmax.f32 %v1340_v27, 0.0 }
 0x241   : > { %v1355_v43 = vpop.f32.mrf.mxu0 }
 0x242   : > { %v1448_v7 = vmax.f32 %v1364_v3, 0.0  ;;  %v1356_v11 = vadd.f32 %v2876_v60, %v1355_v43  ;;  %v1434_v3 = vmax.f32 %v1308_v29, 0.0 }
 0x243   : > { %v2202_v44 = vpop.f32.mrf.mxu0 }
 0x244   : > { %v1367_v61 = vadd.f32 %v2202_v44, %v2876_v60  ;;  %v1446_v16 = vmax.f32 %v1356_v11, 0.0  ;;  %v2452_v11 = vmov 1966171168  }
 0x245   : > { %v1358_v45 = vpop.f32.mrf.mxu0 }
 0x246   : > { %v1449_v4 = vmax.f32 %v1367_v61, 0.0  ;;  %v1359_v8 = vadd.f32 %v2876_v60, %v1358_v45  ;;  %v1441_v45 = vmax.f32 %v1335_v39, 0.0 }
 0x248   : > { %v1447_v12 = vmax.f32 %v1359_v8, 0.0 }
 0x24f   : > { %v2861_v46 = vpop.f32.mrf.mxu0 }
 0x251   : > { %v2863_v47 = vpop.f32.mrf.mxu0 }
 0x253   : > { %v2865_v48 = vpop.f32.mrf.mxu0 }
 0x255   : > { %v2867_v49 = vpop.f32.mrf.mxu0 }
 0x25f   : > { %v2209_v50 = vpop.f32.mrf.mxu0 }
 0x260   : > { %v1396_v43 = vadd.f32 %v2209_v50, %v2876_v60  ;;  %v1327_v50 = vadd.f32 %v2876_v60, %v2850_v35  ;;  %v1319_v35 = vadd.f32 %v2840_v31, %v2876_v60  ;;  %v1436_v31 = vmax.f32 %v1316_v34, 0.0 }
 0x261   : > { %v2869_v51 = vpop.f32.mrf.mxu0 }
 0x263   : > { %v2210_v52 = vpop.f32.mrf.mxu0 }
 0x264   : > { %v1399_v36 = vadd.f32 %v2210_v52, %v2876_v60  ;;  %v1456_v52 = vmax.f32 %v1396_v43, 0.0 }
 0x265   : > { %v2871_v53 = vpop.f32.mrf.mxu0 }
 0x266   : > { %v1457_v44 = vmax.f32 %v1399_v36, 0.0 }
 0x26f   : > { %v2213_v54 = vpop.f32.mrf.mxu0 }
 0x270   : > { %v1412_v17 = vadd.f32 %v2213_v54, %v2876_v60  ;;  %v1391_v54 = vadd.f32 %v2876_v60, %v2871_v53  ;;  %v1439_v53 = vmax.f32 %v1327_v50, 0.0 }
 0x271   : > { %v1403_v55 = vpop.f32.mrf.mxu0 }
 0x272   : > { %v1460_v21 = vmax.f32 %v1412_v17, 0.0  ;;  %v1404_v25 = vadd.f32 %v2876_v60, %v1403_v55  ;;  %v1388_v55 = vadd.f32 %v2876_v60, %v2869_v51  ;;  %v1438_v51 = vmax.f32 %v1324_v33, 0.0 }
 0x273   : > { %v2214_v56 = vpop.f32.mrf.mxu0 }
 0x274   : > { %v1415_v13 = vadd.f32 %v2214_v56, %v2876_v60  ;;  %v1458_v38 = vmax.f32 %v1404_v25, 0.0  ;;  %v1455_v56 = vmax.f32 %v1391_v54, 0.0 }
 0x275   : > { %v1406_v57 = vpop.f32.mrf.mxu0 }
 0x276   : > { %v1461_v18 = vmax.f32 %v1415_v13, 0.0  ;;  %v1407_v22 = vadd.f32 %v2876_v60, %v1406_v57  ;;  %v1383_v57 = vadd.f32 %v2865_v48, %v2876_v60  ;;  %v1437_v48 = vmax.f32 %v1319_v35, 0.0 }
 0x278   : > { %v1459_v26 = vmax.f32 %v1407_v22, 0.0  ;;  %v1453_v61 = vmax.f32 %v1383_v57, 0.0 }
 0x27f   : > { %v2217_v58 = vpop.f32.mrf.mxu0 }
 0x280   : > { %v1428_v63 = vadd.f32 %v2217_v58, %v2876_v60  ;;  %v1454_v58 = vmax.f32 %v1388_v55, 0.0 }
 0x281   : > { %v1419_v59 = vpop.f32.mrf.mxu0 }
 0x282   : > { %v1464_v5 = vmax.f32 %v1428_v63, 0.0  ;;  %v1420_v9 = vadd.f32 %v2876_v60, %v1419_v59  ;;  %v1380_v59 = vadd.f32 %v2861_v46, %v2876_v60  ;;  %v1375_v63 = vadd.f32 %v2876_v60, %v2867_v49 }
 0x283   : > { %v2218_v62 = vpop.f32.mrf.mxu0  ;;  %v1311_v46 = vadd.f32 %v2876_v60, %v2842_v32  ;;  %v1468_v32 = vstv %s1467_s12 }
 0x284   : > { %v1431_v0 = vadd.f32 %v2218_v62, %v2876_v60  ;;  %v1462_v14 = vmax.f32 %v1420_v9, 0.0  ;;  %v1452_v62 = vmax.f32 %v1380_v59, 0.0 }
 0x285   : > { %v1422_v1 = vpop.f32.mrf.mxu0  ;;  %v1435_v49 = vmax.f32 %v1311_v46, 0.0 }
 0x286   : > { %v1465_v2 = vmax.f32 %v1431_v0, 0.0  ;;  %v1423_v6 = vadd.f32 %v2876_v60, %v1422_v1  ;;  %v1372_v0 = vadd.f32 %v2876_v60, %v2863_v47  ;;  %v1451_v1 = vmax.f32 %v1375_v63, 0.0 }
 0x288   : > { %2137 = vmatprep.subr.msk.mxu1 %vm1469_vm2, %v1465_v2  ;;  %v1463_v10 = vmax.f32 %v1423_v6, 0.0  ;;  %v1450_v2 = vmax.f32 %v1372_v0, 0.0 }
 0x289   : > { %2138 = vmatpush3.xpose.msk.msra.mxu1 %vm1469_vm2, %v1449_v4 }
 0x28a   : > { %2139 = vmatprep.subr.msk.mxu1 %vm1469_vm2, %v1464_v5 }
 0x28d   : > { %2140 = vmatpush3.xpose.msk.msra.mxu1 %vm1469_vm2, %v1448_v7 }
 0x28e   : > { %2141 = vmatprep.subr.msk.mxu1 %vm1469_vm2, %v1463_v10 }
 0x291   : > { %2142 = vmatpush3.xpose.msk.msra.mxu1 %vm1469_vm2, %v1447_v12  ;;  %v1658_v12 = vlaneseq }
 0x292   : > { %2143 = vmatprep.subr.msk.mxu1 %vm1469_vm2, %v1462_v14 }
 0x293   : > { %v1659_v14 = vshrl.u32 %v1658_v12, 7  ;;  %vm1672_vm3 = vcmp.lt.s32.totalorder %v1658_v12, 256 }
 0x295   : > { %2144 = vmatpush3.xpose.msk.msra.mxu1 %vm1469_vm2, %v1446_v16 }
 0x296   : > { %2145 = vmatprep.subr.msk.mxu1 %vm1469_vm2, %v1461_v18 }
 0x299   : > { %2146 = vmatpush3.xpose.msk.msra.mxu1 %vm1469_vm2, %v1445_v20 }
 0x29a   : > { %2147 = vmatprep.subr.msk.mxu1 %vm1469_vm2, %v1460_v21 }
 0x29d   : > { %2148 = vmatpush3.xpose.msk.msra.mxu1 %vm1469_vm2, %v1444_v23 }
 0x29e   : > { %2149 = vmatprep.subr.msk.mxu1 %vm1469_vm2, %v1459_v26 }
 0x2a1   : > { %2150 = vmatpush3.xpose.msk.msra.mxu1 %vm1469_vm2, %v1443_v28 }
 0x2a2   : > { %2151 = vmatprep.subr.msk.mxu1 %vm1469_vm2, %v1458_v38 }
 0x2a5   : > { %2152 = vmatpush3.xpose.msk.msra.mxu1 %vm1469_vm2, %v1442_v41 }
 0x2a6   : > { %2153 = vmatprep.subr.msk.mxu1 %vm1469_vm2, %v1457_v44 }
 0x2a9   : > { %2154 = vmatpush3.xpose.msk.msra.mxu1 %vm1469_vm2, %v1441_v45 }
 0x2aa   : > { %2155 = vmatprep.subr.msk.mxu1 %vm1469_vm2, %v1456_v52 }
 0x2ad   : > { %2156 = vmatpush3.xpose.msk.msra.mxu1 %vm1469_vm2, %v1440_v42 }
 0x2ae   : > { %2157 = vmatprep.subr.msk.mxu1 %vm1469_vm2, %v1455_v56 }
 0x2b1   : > { %2158 = vmatpush3.xpose.msk.msra.mxu1 %vm1469_vm2, %v1439_v53 }
 0x2b2   : > { %2159 = vmatprep.subr.msk.mxu1 %vm1469_vm2, %v1454_v58 }
 0x2b5   : > { %2160 = vmatpush3.xpose.msk.msra.mxu1 %vm1469_vm2, %v1438_v51 }
 0x2b6   : > { %2161 = vmatprep.subr.msk.mxu1 %vm1469_vm2, %v1453_v61 }
 0x2b9   : > { %2162 = vmatpush3.xpose.msk.msra.mxu1 %vm1469_vm2, %v1437_v48 }
 0x2ba   : > { %2163 = vmatprep.subr.msk.mxu1 %vm1469_vm2, %v1452_v62 }
 0x2bd   : > { %2164 = vmatpush3.xpose.msk.msra.mxu1 %vm1469_vm2, %v1436_v31 }
 0x2be   : > { %2165 = vmatprep.subr.msk.mxu1 %vm1469_vm2, %v1451_v1 }
 0x2c1   : > { %2166 = vmatpush3.xpose.msk.msra.mxu1 %vm1469_vm2, %v1435_v49 }
 0x2c2   : > { %2167 = vmatprep.subr.msk.mxu1 %vm1469_vm2, %v1450_v2 }
 0x2c5   : > { %2168 = vmatpush3.xpose.msk.msra.mxu1 %vm1469_vm2, %v1434_v3 }
 0x2c8   : > { %2170 = vmatmul.mubr.msk.f32.vlgmr.msra.gmra.mxu1 %vm1469_vm2, %v2857_v40  ;;  %v1656_v40 = vunpack.c.l.s4 %v2452_v11 }
 0x2ca   : > { %v1657_v13 = vunpack.c.0.s8 %v1656_v40 }
 0x2cc   : > { %v1660_v16 = vsub.s32 %v1657_v13, %v1659_v14 }
 0x388   : > { %v1635_v47 = vpop.f32.mrf.mxu1 }
 0x389   : > { %v1636_v4 = vadd.f32 %v1635_v47, %v1468_v32 }
 0x38a   : > { %v1637_v5 = vpop.f32.mrf.mxu1 }
 0x38b   : > { %v1878_v6 = vmul.f32 -1.442695, %v1636_v4  ;;  %v1638_v30 = vadd.f32 %v1637_v5, %v1468_v32 }
 0x38d   : > { %2316 = vpow2.f32 %v1878_v6  ;;  %v1879_v60 = vmul.f32 -1.442695, %v1638_v30 }
 0x38f   : > { %2318 = vpow2.f32 %v1879_v60 }
 0x39a   : > { %v2317_v7 = vpop.eup %2316 }
 0x39b   : > { %v1646_v8 = vadd.f32 1.0, %v2317_v7 }
 0x39c   : > { %v2319_v9 = vpop.eup %2318 }
 0x39d   : > { %v1647_v10 = vadd.f32 1.0, %v2319_v9  ;;  %2320 = vrcp.f32 %v1646_v8 }
 0x39f   : > { %2322 = vrcp.f32 %v1647_v10 }
 0x3aa   : > { %v2321_v15 = vpop.eup %2320 }
 0x3ac   : > { %v2323_v17 = vpop.eup %2322 }
 0x3ad   : > { %v1654_v18 = vcombine.low %v2321_v15, %v2323_v17 }
 0x3af   : > { %v1661_v19 = vrot.slane %v1654_v18, %v1660_v16 }
 0x3b1   : > { %v1668_v20 = vrot.slane %v1661_v19, %v1660_v16 }
 0x3b3   : > { %1674 = vst.msk [vmem:[%s320_s1] sm:$0x3] %vm1672_vm3, %v1668_v20 }
 0x3b4   : > { %2389 = shalt.err (!%p2386_p8)
}
 0x3b5   : > { %s2390_s22 = scalar_lea.hbm %s1688_s13, 32  ;;  %s2394_s19 = scalar_lea.hbm %s3002_s7, 64 }
 0x3b6   : > { %p2391_p9 = scmp.ne.s32.totalorder %s1688_s13, %s2390_s22  ;;  %p2395_p12 = scmp.lt.s32.totalorder %s1688_s13, %s3002_s7 }
 0x3b7   : > { %p2396_p2 = scmp.lt.s32.totalorder %s2394_s19, %s2390_s22 }
 0x3b8   : > { %p2392_p6 = pnand %p2391_p9, %p3014_p13 }
 0x3b9   : > { %p2397_p10 = por %p2396_p2, %p2395_p12 }
 0x3ba   : > { %p2393_p11 = pneg %p2392_p6 }
 0x3bc   : > { %p2398_p4 = pnand %p2397_p10, %p2393_p11 }
 0x3be   : > { %2401 = shalt.err (!%p2398_p4)
}
 0x3bf   : > { %2225 = dma.vmem_to_hbm [thread:$0]  (%p3014_p13), %s1691_s24, 32, %s1688_s13, %s1676_s16  }
 0x3c0 PF: > { %s1702_s21 = sand.u32 1, %s2432_s26   ;;  %p3015_p5 = scmp.ne.s32.totalorder %s3010_s15, 0 }
 0x3c1   : > { %p3016_p1 = scmp.ge.s32.totalorder %s2444_s29, 2  ;;  %s1703_s1 = scalar_lea.sflag [#allocation5], %s1702_s21 }
 0x3c3   : > { %p2232_p0 = pnand %p3016_p1, %p3015_p5 }
 0x3c5   : > { %p2233_p7 = pneg %p2232_p0 }
 0x3c7   : > { %2427 = dma.done.wait (%p2233_p7), %s1703_s1, 32  }
 0x3c8   : > { %2429 = vsyncadd (%p2233_p7), %s1703_s1, 4294967264  ;;  %p22_p3 = scmp.ge.s32.totalorder %s2522_s8, 4   ;;  %s3017_s26 = smov %s2436_s27 }
 0x3c9   : > { %s3018_s27 = smov %s2440_s28  ;;  %s3019_s28 = smov %s2534_s11 }
 0x3ca   : > { %s3020_s29 = smov %s2522_s8  ;;  %24 = sbr.rel (!%p22_p3) target bundleno = 9 (0x9), region = 97 }
 0x3cf   :  { %1708 = vsyncpa [#allocation4], 1 }
 0x3d0   :  { %1710 = vsyncpa [#allocation4 + $0x1], 1 }
 0x3d1   :  { %1711 = vsyncpa [#allocation7], 1 }
 0x3d2   :  { %1712 = vsyncpa [#allocation5], 1 }
 0x3d3   :  { %1714 = vsyncpa [#allocation5 + $0x1], 1 }

</bundles_post_ra>
